<compile_context>
chip_gen: v7x
topology: tpu7x:2x2x1
jax: 0.10.0
libtpu: 0.0.40
codegen_flags: <defaults>
</compile_context>

<pallas_src>
import functools

import jax
import jax.numpy as jnp
from jax import lax
from jax.experimental import pallas as pl
from jax.experimental.pallas import tpu as pltpu

_EPS = 1e-5                       # nn.LayerNorm default
_MAX_ROW_TILE = 512               # on v5e consider 256 (smaller scoped VMEM, lower HBM BW)
_VMEM_LIMIT = 48 * 1024 * 1024    # < v7x 64 MiB physical, > v5e/v6e default scoped limits


def _round_up(x, m):
    return (x + m - 1) // m * m


def _compiler_params():
    return pltpu.CompilerParams(
        dimension_semantics=("parallel",),   # v7x megacore: shard grid over both TCs
        vmem_limit_bytes=_VMEM_LIMIT,
    )


def _gelu_tanh(x):
    # tanh-approximate GELU in f32.
    # TODO(synk): PyTorch GEGLU uses exact erf GELU; tanh approximation kept (reference matches).
    c = 0.7978845608028654  # sqrt(2/pi)
    return 0.5 * x * (1.0 + jnp.tanh(c * (x + 0.044715 * x * x * x)))


def _layernorm_f32(x, g, b, eps=_EPS):
    x = x.astype(jnp.float32)
    mu = jnp.mean(x, axis=-1, keepdims=True)
    xc = x - mu
    var = jnp.mean(xc * xc, axis=-1, keepdims=True)
    return xc * lax.rsqrt(var + eps) * g.astype(jnp.float32) + b.astype(jnp.float32)


# --------------------------------------------------------------------------------------
# fused Pallas kernels (row-tiled, streamed along a 'parallel' grid axis)
# --------------------------------------------------------------------------------------
def _proj_in_kernel(x_ref, w_ref, o_ref):
    x = x_ref[...].astype(jnp.bfloat16)
    o_ref[...] = jnp.dot(x, w_ref[...], preferred_element_type=jnp.float32).astype(o_ref.dtype)


def _ln_qkv_kernel(x_ref, g_ref, b_ref, wq_ref, wk_ref, wv_ref, q_ref, k_ref, v_ref):
    # Fused pre-LN + Q/K/V projections: the LayerNorm'd tile is computed once and reused.
    y = _layernorm_f32(x_ref[...], g_ref[...], b_ref[...]).astype(jnp.bfloat16)
    q_ref[...] = jnp.dot(y, wq_ref[...], preferred_element_type=jnp.float32).astype(q_ref.dtype)
    k_ref[...] = jnp.dot(y, wk_ref[...], preferred_element_type=jnp.float32).astype(k_ref.dtype)
    v_ref[...] = jnp.dot(y, wv_ref[...], preferred_element_type=jnp.float32).astype(v_ref.dtype)


def _ln_q_kernel(x_ref, g_ref, b_ref, wq_ref, q_ref):
    y = _layernorm_f32(x_ref[...], g_ref[...], b_ref[...]).astype(jnp.bfloat16)
    q_ref[...] = jnp.dot(y, wq_ref[...], preferred_element_type=jnp.float32).astype(q_ref.dtype)


def _kv_kernel(c_ref, wk_ref, wv_ref, k_ref, v_ref):
    # Cross-attention K/V from the (un-normalized) context.
    c = c_ref[...].astype(jnp.bfloat16)
    k_ref[...] = jnp.dot(c, wk_ref[...], preferred_element_type=jnp.float32).astype(k_ref.dtype)
    v_ref[...] = jnp.dot(c, wv_ref[...], preferred_element_type=jnp.float32).astype(v_ref.dtype)


def _proj_residual_kernel(a_ref, res_ref, w_ref, b_ref, o_ref):
    # Fused output projection + bias + residual add.
    y = jnp.dot(a_ref[...], w_ref[...], preferred_element_type=jnp.float32)
    y = y + b_ref[...].astype(jnp.float32) + res_ref[...].astype(jnp.float32)
    o_ref[...] = y.astype(o_ref.dtype)


def _ln_geglu_kernel(x_ref, g_ref, b_ref, wv_ref, wg_ref, bv_ref, bg_ref, o_ref):
    # Fused pre-LN + GEGLU with lane-aligned separate value/gate weights.
    y = _layernorm_f32(x_ref[...], g_ref[...], b_ref[...]).astype(jnp.bfloat16)
    val = jnp.dot(y, wv_ref[...], preferred_element_type=jnp.float32) + bv_ref[...].astype(jnp.float32)
    gate = jnp.dot(y, wg_ref[...], preferred_element_type=jnp.float32) + bg_ref[...].astype(jnp.float32)
    o_ref[...] = (val * _gelu_tanh(gate)).astype(o_ref.dtype)


def _ln_proj_kernel(x_ref, g_ref, b_ref, w_ref, o_ref):
    # Final LayerNorm fused into proj_out (no bias).
    y = _layernorm_f32(x_ref[...], g_ref[...], b_ref[...]).astype(jnp.bfloat16)
    o_ref[...] = jnp.dot(y, w_ref[...], preferred_element_type=jnp.float32).astype(o_ref.dtype)


def _attention_kernel(q_ref, k_ref, v_ref, o_ref, *, n_heads, d_head, scale):
    # One batch element per grid step; all heads handled inside the kernel (amortizes
    # per-grid-step overhead and removes host-side head split/merge HBM transposes).
    q = q_ref[0]       # (Nq, H*d) bf16
    k = k_ref[0]       # (Nk, H*d) bf16
    v = v_ref[0]       # (Nk, H*d) bf16
    for h in range(n_heads):                       # static, unrolled
        sl = slice(h * d_head, (h + 1) * d_head)
        qh, kh, vh = q[:, sl], k[:, sl], v[:, sl]
        s = lax.dot_general(qh, kh, (((1,), (1,)), ((), ())),
                            preferred_element_type=jnp.float32) * scale   # (Nq, Nk) f32
        s = s - jnp.max(s, axis=-1, keepdims=True)
        p = jnp.exp(s)
        p = p * pl.reciprocal(jnp.sum(p, axis=-1, keepdims=True), approx=True)   # EUP divide
        o = jnp.dot(p.astype(vh.dtype), vh, preferred_element_type=jnp.float32)  # (Nq, d)
        o_ref[0, :, sl] = o.astype(o_ref.dtype)
    # TODO(synk): for large Nk, tile over keys with an online-softmax accumulator (v7x VMEM).


# --------------------------------------------------------------------------------------
# pallas_call wrappers
# --------------------------------------------------------------------------------------
def _row_call(kernel, row_inputs, resident_inputs, out_dims, *, out_dtype=jnp.bfloat16,
              max_row_tile=_MAX_ROW_TILE):
    """Stream `row_inputs` ((rows, feat_i) each) over a 1-D 'parallel' grid of row tiles.

    `resident_inputs` (weights / biases / LN params) use full-array BlockSpecs pinned to
    block (0, 0) so they are fetched once and stay VMEM-resident across grid steps.
    Produces one (rows, d) output per entry of `out_dims` (bf16 by default).
    """
    rows = row_inputs[0].shape[0]
    row_tile = min(max_row_tile, _round_up(rows, 16))     # 16: bf16 sublane packing
    grid = (pl.cdiv(rows, row_tile),)                     # no jnp.pad: boundary block is masked

    in_specs = [pl.BlockSpec((row_tile, a.shape[1]), lambda i: (i, 0)) for a in row_inputs]
    in_specs += [pl.BlockSpec(e.shape, lambda i, nd=e.ndim: (0,) * nd) for e in resident_inputs]

    single = isinstance(out_dims, int)
    dims = (out_dims,) if single else tuple(out_dims)
    out_shape = tuple(jax.ShapeDtypeStruct((rows, d), out_dtype) for d in dims)
    out_specs = tuple(pl.BlockSpec((row_tile, d), lambda i: (i, 0)) for d in dims)

    return pl.pallas_call(
        kernel,
        grid=grid,
        in_specs=in_specs,
        out_specs=out_specs[0] if single else out_specs,
        out_shape=out_shape[0] if single else out_shape,
        compiler_params=_compiler_params(),
    )(*row_inputs, *resident_inputs)


def attention_pallas(q, k, v, B, Nq, Nk, n_heads, d_head):
    """q: (B*Nq, H*d), k/v: (B*Nk, H*d) -> (B*Nq, H*d).

    The (B, N, H*d) views are free contiguous reshapes; the head split happens in VMEM,
    so no HBM transposes are issued."""
    inner = n_heads * d_head
    qb = q.reshape(B, Nq, inner)
    kb = k.reshape(B, Nk, inner)
    vb = v.reshape(B, Nk, inner)
    out = pl.pallas_call(
        functools.partial(_attention_kernel, n_heads=n_heads, d_head=d_head,
                          scale=float(d_head) ** -0.5),
        grid=(B,),
        in_specs=[pl.BlockSpec((1, Nq, inner), lambda b: (b, 0, 0)),
                  pl.BlockSpec((1, Nk, inner), lambda b: (b, 0, 0)),
                  pl.BlockSpec((1, Nk, inner), lambda b: (b, 0, 0))],
        out_specs=pl.BlockSpec((1, Nq, inner), lambda b: (b, 0, 0)),
        out_shape=jax.ShapeDtypeStruct((B, Nq, inner), q.dtype),
        compiler_params=_compiler_params(),
    )(qb, kb, vb)
    return out.reshape(B * Nq, inner)


# --------------------------------------------------------------------------------------
# model forward (Pallas) and parameter init
# --------------------------------------------------------------------------------------
def _block_forward(h, p, B, N, cond, n_heads, d_head):
    """One LatentTransformerBlock on flattened bf16 activations h: (B*N, inner)."""
    inner = n_heads * d_head

    # --- self-attention (fused LN + QKV, fused out-proj + residual) ---
    q, k, v = _row_call(_ln_qkv_kernel, [h],
                        [p["ln1_g"], p["ln1_b"], p["attn1_wq"], p["attn1_wk"], p["attn1_wv"]],
                        [inner, inner, inner])
    a = attention_pallas(q, k, v, B, N, N, n_heads, d_head)
    h = _row_call(_proj_residual_kernel, [a, h], [p["attn1_wo"], p["attn1_bo"]], inner)

    # --- cross-attention (falls back to self-attention when cond is None) ---
    if cond is None:
        q, k, v = _row_call(_ln_qkv_kernel, [h],
                            [p["ln2_g"], p["ln2_b"], p["attn2_wq"], p["attn2_wk"], p["attn2_wv"]],
                            [inner, inner, inner])
        Nk = N
    else:
        q = _row_call(_ln_q_kernel, [h], [p["ln2_g"], p["ln2_b"], p["attn2_wq"]], inner)
        Bc, Nk, Dc = cond.shape
        c2d = cond.reshape(Bc * Nk, Dc)
        k, v = _row_call(_kv_kernel, [c2d], [p["attn2_wk"], p["attn2_wv"]], [inner, inner])
    a = attention_pallas(q, k, v, B, N, Nk, n_heads, d_head)
    h = _row_call(_proj_residual_kernel, [a, h], [p["attn2_wo"], p["attn2_bo"]], inner)

    # --- GEGLU feed-forward (fused LN + GEGLU, fused out-proj + residual) ---
    ffd = p["ff_w_val"].shape[1]
    g = _row_call(_ln_geglu_kernel, [h],
                  [p["ln3_g"], p["ln3_b"], p["ff_w_val"], p["ff_w_gate"],
                   p["ff_b_val"], p["ff_b_gate"]], ffd)
    h = _row_call(_proj_residual_kernel, [g, h], [p["ff_w2"], p["ff_b2"]], inner)
    return h


def latent_array_transformer_forward(x, params, cond=None, cond_mask=None, *, n_heads, d_head):
    """x: (B, N, in_channels) f32 -> (B, N, out_channels) f32."""
    if cond_mask is not None:
        # TODO(synk): context key-padding mask not implemented in the fused attention kernel.
        raise NotImplementedError("cond_mask is not supported")
    B, N, Cin = x.shape
    rows = B * N
    inner = n_heads * d_head

    h = _row_call(_proj_in_kernel, [x.reshape(rows, Cin)], [params["proj_in_w"]], inner)
    for blk in params["blocks"]:
        h = _block_forward(h, blk, B, N, cond, n_heads, d_head)
    out = _row_call(_ln_proj_kernel, [h],
                    [params["norm_g"], params["norm_b"], params["proj_out_w"]],
                    params["proj_out_w"].shape[1], out_dtype=jnp.float32)
    return out.reshape(B, N, -1)


def init_params(key, in_channels, n_heads, d_head, depth=1, context_dim=None,
                out_channels=None, ff_mult=4, w_dtype=jnp.bfloat16):
    """PyTorch-style init (Linear ~ U(+-1/sqrt(fan_in)), proj_out zeroed); weights in bf16."""
    inner = n_heads * d_head
    ctx_dim = inner if context_dim is None else context_dim
    out_ch = in_channels if out_channels is None else out_channels

    def lin_w(k, fan_in, fan_out):
        bound = float(fan_in) ** -0.5
        return jax.random.uniform(k, (fan_in, fan_out), jnp.float32, -bound, bound).astype(w_dtype)

    def lin_b(k, fan_in, fan_out):
        bound = float(fan_in) ** -0.5
        return jax.random.uniform(k, (1, fan_out), jnp.float32, -bound, bound)   # biases stay f32

    keys = jax.random.split(key, depth + 1)
    params = {"proj_in_w": lin_w(keys[0], in_channels, inner)}

    blocks = []
    for i in range(depth):
        bk = jax.random.split(keys[1 + i], 12)
        blk = {
            "ln1_g": jnp.ones((1, inner), jnp.float32), "ln1_b": jnp.zeros((1, inner), jnp.float32),
            "ln2_g": jnp.ones((1, inner), jnp.float32), "ln2_b": jnp.zeros((1, inner), jnp.float32),
            "ln3_g": jnp.ones((1, inner), jnp.float32), "ln3_b": jnp.zeros((1, inner), jnp.float32),
            "attn1_wq": lin_w(bk[0], inner, inner),
            "attn1_wk": lin_w(bk[1], inner, inner),
            "attn1_wv": lin_w(bk[2], inner, inner),
            "attn1_wo": lin_w(bk[3], inner, inner), "attn1_bo": lin_b(bk[3], inner, inner),
            "attn2_wq": lin_w(bk[4], inner, inner),
            "attn2_wk": lin_w(bk[5], ctx_dim, inner),
            "attn2_wv": lin_w(bk[6], ctx_dim, inner),
            "attn2_wo": lin_w(bk[7], inner, inner), "attn2_bo": lin_b(bk[7], inner, inner),
            "ff_w_val": lin_w(bk[8], inner, ff_mult * inner),
            "ff_b_val": lin_b(bk[8], inner, ff_mult * inner),
            "ff_w_gate": lin_w(bk[9], inner, ff_mult * inner),
            "ff_b_gate": lin_b(bk[9], inner, ff_mult * inner),
            "ff_w2": lin_w(bk[10], ff_mult * inner, inner),
            "ff_b2": lin_b(bk[10], ff_mult * inner, inner),
        }
        blocks.append(blk)
    params["blocks"] = blocks

    params["norm_g"] = jnp.ones((1, inner), jnp.float32)
    params["norm_b"] = jnp.zeros((1, inner), jnp.float32)
    params["proj_out_w"] = jnp.zeros((inner, out_ch), w_dtype)   # zero_module
    return params


# --------------------------------------------------------------------------------------
# pure-JAX reference mirroring the kernel's precision policy (bf16 matmuls, f32 accumulate)
# --------------------------------------------------------------------------------------
def _ref_dot(x, w):
    return jnp.dot(x.astype(jnp.bfloat16), w, preferred_element_type=jnp.float32)


def _ref_attention(q, k, v, n_heads, d_head):
    B, Nq, _ = q.shape
    Nk = k.shape[1]
    qh = q.reshape(B, Nq, n_heads, d_head).transpose(0, 2, 1, 3)
    kh = k.reshape(B, Nk, n_heads, d_head).transpose(0, 2, 1, 3)
    vh = v.reshape(B, Nk, n_heads, d_head).transpose(0, 2, 1, 3)
    s = jnp.einsum("bhqd,bhkd->bhqk", qh, kh,
                   preferred_element_type=jnp.float32) * (float(d_head) ** -0.5)
    s = s - jnp.max(s, axis=-1, keepdims=True)
    p = jnp.exp(s)
    p = p / jnp.sum(p, axis=-1, keepdims=True)
    o = jnp.einsum("bhqk,bhkd->bhqd", p.astype(jnp.bfloat16), vh,
                   preferred_element_type=jnp.float32)
    return o.transpose(0, 2, 1, 3).reshape(B, Nq, n_heads * d_head).astype(jnp.bfloat16)


def _ref_block(h, p, cond, n_heads, d_head):
    hf = h.astype(jnp.float32)
    y = _layernorm_f32(hf, p["ln1_g"][0], p["ln1_b"][0])
    q = _ref_dot(y, p["attn1_wq"]).astype(jnp.bfloat16)
    k = _ref_dot(y, p["attn1_wk"]).astype(jnp.bfloat16)
    v = _ref_dot(y, p["attn1_wv"]).astype(jnp.bfloat16)
    a = _ref_attention(q, k, v, n_heads, d_head)
    h = (hf + _ref_dot(a, p["attn1_wo"]) + p["attn1_bo"][0]).astype(jnp.bfloat16)

    hf = h.astype(jnp.float32)
    y = _layernorm_f32(hf, p["ln2_g"][0], p["ln2_b"][0])
    q = _ref_dot(y, p["attn2_wq"]).astype(jnp.bfloat16)
    ctx = y if cond is None else cond
    k = _ref_dot(ctx, p["attn2_wk"]).astype(jnp.bfloat16)
    v = _ref_dot(ctx, p["attn2_wv"]).astype(jnp.bfloat16)
    a = _ref_attention(q, k, v, n_heads, d_head)
    h = (hf + _ref_dot(a, p["attn2_wo"]) + p["attn2_bo"][0]).astype(jnp.bfloat16)

    hf = h.astype(jnp.float32)
    y = _layernorm_f32(hf, p["ln3_g"][0], p["ln3_b"][0])
    val = _ref_dot(y, p["ff_w_val"]) + p["ff_b_val"][0]
    gate = _ref_dot(y, p["ff_w_gate"]) + p["ff_b_gate"][0]
    g = (val * _gelu_tanh(gate)).astype(jnp.bfloat16)
    h = (hf + _ref_dot(g, p["ff_w2"]) + p["ff_b2"][0]).astype(jnp.bfloat16)
    return h


def reference_forward(x, params, cond=None, *, n_heads, d_head):
    h = _ref_dot(x, params["proj_in_w"]).astype(jnp.bfloat16)
    for p in params["blocks"]:
        h = _ref_block(h, p, cond, n_heads, d_head)
    y = _layernorm_f32(h.astype(jnp.float32), params["norm_g"][0], params["norm_b"][0])
    return _ref_dot(y, params["proj_out_w"])


# --------------------------------------------------------------------------------------
# demo / correctness check
# --------------------------------------------------------------------------------------
if __name__ == "__main__":
    key = jax.random.PRNGKey(0)
    kx, kp, kw, kc, kp2, kw2 = jax.random.split(key, 6)

    B, N = 2, 8                                  # latent array: batch=2, seq=8
    in_channels, n_heads, d_head = 8, 2, 16      # inner_dim = 32
    depth = 2

    x = jax.random.normal(kx, (B, N, in_channels), jnp.float32)
    params = init_params(kp, in_channels, n_heads, d_head, depth=depth)

    fwd = jax.jit(functools.partial(latent_array_transformer_forward,
                                    n_heads=n_heads, d_head=d_head))

    # 1) faithful module: proj_out is zero-initialized -> output is exactly zero.
    out = jax.block_until_ready(fwd(x, params))
    ref = reference_forward(x, params, n_heads=n_heads, d_head=d_head)
    assert out.shape == (B, N, in_channels), out.shape
    assert jnp.allclose(out, ref, atol=1e-3, rtol=1e-3)

    # 2) meaningful numeric check: swap in a non-zero output projection.
    inner = n_heads * d_head
    params2 = dict(params)
    params2["proj_out_w"] = (0.1 * jax.random.normal(kw, (inner, in_channels), jnp.float32)
                             ).astype(jnp.bfloat16)
    out2 = jax.block_until_ready(fwd(x, params2))
    ref2 = reference_forward(x, params2, n_heads=n_heads, d_head=d_head)
    err2 = float(jnp.max(jnp.abs(out2 - ref2)))
    assert jnp.allclose(out2, ref2, atol=3e-2, rtol=3e-2), err2

    # 3) cross-attention path with an external conditioning sequence.
    context_dim, M = 16, 8
    params3 = init_params(kp2, in_channels, n_heads, d_head, depth=depth,
                          context_dim=context_dim)
    params3["proj_out_w"] = (0.1 * jax.random.normal(kw2, (inner, in_channels), jnp.float32)
                             ).astype(jnp.bfloat16)
    cond = jax.random.normal(kc, (B, M, context_dim), jnp.float32)
    out3 = jax.block_until_ready(fwd(x, params3, cond))
    ref3 = reference_forward(x, params3, cond, n_heads=n_heads, d_head=d_head)
    err3 = float(jnp.max(jnp.abs(out3 - ref3)))
    assert jnp.allclose(out3, ref3, atol=3e-2, rtol=3e-2), err3

    print("KERNEL_OK")
</pallas_src>

<mosaic_0001>
module attributes {stable_mosaic.version = 11 : i64} {
  func.func @_proj_residual_kernel(%arg0: i32, %arg1: memref<16x32xbf16, #tpu.memory_space<vmem>>, %arg2: memref<16x32xbf16, #tpu.memory_space<vmem>>, %arg3: memref<32x32xbf16, #tpu.memory_space<vmem>>, %arg4: memref<1x32xf32, #tpu.memory_space<vmem>>, %arg5: memref<16x32xbf16, #tpu.memory_space<vmem>>) attributes {dimension_semantics = [#tpu.dimension_semantics<parallel>], iteration_bounds = array<i64: 1>, scalar_prefetch = 0 : i64, scratch_operands = 0 : i64, tpu.core_type = #tpu.core_type<tc>, window_params = [{transform_indices = @transform_0, window_bounds = array<i64: 16, 32>}, {transform_indices = @transform_1, window_bounds = array<i64: 16, 32>}, {pipeline_mode = #tpu.pipeline_mode<synchronous>, transform_indices = @transform_2, window_bounds = array<i64: 32, 32>}, {pipeline_mode = #tpu.pipeline_mode<synchronous>, transform_indices = @transform_3, window_bounds = array<i64: 1, 32>}, {transform_indices = @transform_4, window_bounds = array<i64: 16, 32>}]} {
    %c0 = arith.constant 0 : index
    %c0_0 = arith.constant 0 : index
    %0 = vector.load %arg1[%c0, %c0_0] : memref<16x32xbf16, #tpu.memory_space<vmem>>, vector<16x32xbf16>
    %c0_1 = arith.constant 0 : index
    %c0_2 = arith.constant 0 : index
    %1 = vector.load %arg3[%c0_1, %c0_2] : memref<32x32xbf16, #tpu.memory_space<vmem>>, vector<32x32xbf16>
    %cst = arith.constant dense<0.000000e+00> : vector<16x32xf32>
    %2 = tpu.matmul %0, %1, %cst {dimension_numbers = #tpu.dot_dimension_numbers<[1], [0], [0], [1], [0, 0, 1, 1], [], []>} : vector<16x32xbf16>, vector<32x32xbf16>, vector<16x32xf32> -> vector<16x32xf32>
    %c0_3 = arith.constant 0 : index
    %c0_4 = arith.constant 0 : index
    %3 = vector.load %arg4[%c0_3, %c0_4] : memref<1x32xf32, #tpu.memory_space<vmem>>, vector<1x32xf32>
    %4 = vector.broadcast %3 : vector<1x32xf32> to vector<16x32xf32>
    %5 = arith.addf %2, %4 : vector<16x32xf32>
    %c0_5 = arith.constant 0 : index
    %c0_6 = arith.constant 0 : index
    %6 = vector.load %arg2[%c0_5, %c0_6] : memref<16x32xbf16, #tpu.memory_space<vmem>>, vector<16x32xbf16>
    %7 = arith.extf %6 : vector<16x32xbf16> to vector<16x32xf32>
    %8 = arith.addf %5, %7 : vector<16x32xf32>
    %9 = arith.truncf %8 : vector<16x32xf32> to vector<16x32xbf16>
    %c0_7 = arith.constant 0 : index
    %c0_8 = arith.constant 0 : index
    %10 = vector.load %arg5[%c0_7, %c0_8] : memref<16x32xbf16, #tpu.memory_space<vmem>>, vector<16x32xbf16>
    tpu.vector_store %arg5[%c0_7, %c0_8], %9 {strides = array<i32>} : memref<16x32xbf16, #tpu.memory_space<vmem>>, vector<16x32xbf16>,
    return
  }
  func.func @transform_0(%arg0: i32) -> (i32, i32) {
    %c0_i32 = arith.constant 0 : i32
    %c0_i32_0 = arith.constant 0 : i32
    return %arg0, %c0_i32 : i32, i32
  }
  func.func @transform_1(%arg0: i32) -> (i32, i32) {
    %c0_i32 = arith.constant 0 : i32
    %c0_i32_0 = arith.constant 0 : i32
    return %arg0, %c0_i32 : i32, i32
  }
  func.func @transform_2(%arg0: i32) -> (i32, i32) {
    %c0_i32 = arith.constant 0 : i32
    %c0_i32_0 = arith.constant 0 : i32
    %c0_i32_1 = arith.constant 0 : i32
    return %c0_i32, %c0_i32_0 : i32, i32
  }
  func.func @transform_3(%arg0: i32) -> (i32, i32) {
    %c0_i32 = arith.constant 0 : i32
    %c0_i32_0 = arith.constant 0 : i32
    %c0_i32_1 = arith.constant 0 : i32
    return %c0_i32, %c0_i32_0 : i32, i32
  }
  func.func @transform_4(%arg0: i32) -> (i32, i32) {
    %c0_i32 = arith.constant 0 : i32
    %c0_i32_0 = arith.constant 0 : i32
    return %arg0, %c0_i32 : i32, i32
  }
}

module attributes {stable_mosaic.version = 11 : i64} {
  func.func @_proj_in_kernel(%arg0: i32, %arg1: memref<16x8xf32, #tpu.memory_space<vmem>>, %arg2: memref<8x32xbf16, #tpu.memory_space<vmem>>, %arg3: memref<16x32xbf16, #tpu.memory_space<vmem>>) attributes {dimension_semantics = [#tpu.dimension_semantics<parallel>], iteration_bounds = array<i64: 1>, scalar_prefetch = 0 : i64, scratch_operands = 0 : i64, tpu.core_type = #tpu.core_type<tc>, window_params = [{transform_indices = @transform_0, window_bounds = array<i64: 16, 8>}, {pipeline_mode = #tpu.pipeline_mode<synchronous>, transform_indices = @transform_1, window_bounds = array<i64: 8, 32>}, {transform_indices = @transform_2, window_bounds = array<i64: 16, 32>}]} {
    %c0 = arith.constant 0 : index
    %c0_0 = arith.constant 0 : index
    %0 = vector.load %arg1[%c0, %c0_0] : memref<16x8xf32, #tpu.memory_space<vmem>>, vector<16x8xf32>
    %1 = arith.truncf %0 : vector<16x8xf32> to vector<16x8xbf16>
    %c0_1 = arith.constant 0 : index
    %c0_2 = arith.constant 0 : index
    %2 = vector.load %arg2[%c0_1, %c0_2] : memref<8x32xbf16, #tpu.memory_space<vmem>>, vector<8x32xbf16>
    %cst = arith.constant dense<0.000000e+00> : vector<16x32xf32>
    %3 = tpu.matmul %1, %2, %cst {dimension_numbers = #tpu.dot_dimension_numbers<[1], [0], [0], [1], [0, 0, 1, 1], [], []>} : vector<16x8xbf16>, vector<8x32xbf16>, vector<16x32xf32> -> vector<16x32xf32>
    %4 = arith.truncf %3 : vector<16x32xf32> to vector<16x32xbf16>
    %c0_3 = arith.constant 0 : index
    %c0_4 = arith.constant 0 : index
    %5 = vector.load %arg3[%c0_3, %c0_4] : memref<16x32xbf16, #tpu.memory_space<vmem>>, vector<16x32xbf16>
    tpu.vector_store %arg3[%c0_3, %c0_4], %4 {strides = array<i32>} : memref<16x32xbf16, #tpu.memory_space<vmem>>, vector<16x32xbf16>,
    return
  }
  func.func @transform_0(%arg0: i32) -> (i32, i32) {
    %c0_i32 = arith.constant 0 : i32
    %c0_i32_0 = arith.constant 0 : i32
    return %arg0, %c0_i32 : i32, i32
  }
  func.func @transform_1(%arg0: i32) -> (i32, i32) {
    %c0_i32 = arith.constant 0 : i32
    %c0_i32_0 = arith.constant 0 : i32
    %c0_i32_1 = arith.constant 0 : i32
    return %c0_i32, %c0_i32_0 : i32, i32
  }
  func.func @transform_2(%arg0: i32) -> (i32, i32) {
    %c0_i32 = arith.constant 0 : i32
    %c0_i32_0 = arith.constant 0 : i32
    return %arg0, %c0_i32 : i32, i32
  }
}

module attributes {stable_mosaic.version = 11 : i64} {
  func.func @_ln_qkv_kernel(%arg0: i32, %arg1: memref<16x32xbf16, #tpu.memory_space<vmem>>, %arg2: memref<1x32xf32, #tpu.memory_space<vmem>>, %arg3: memref<1x32xf32, #tpu.memory_space<vmem>>, %arg4: memref<32x32xbf16, #tpu.memory_space<vmem>>, %arg5: memref<32x32xbf16, #tpu.memory_space<vmem>>, %arg6: memref<32x32xbf16, #tpu.memory_space<vmem>>, %arg7: memref<16x32xbf16, #tpu.memory_space<vmem>>, %arg8: memref<16x32xbf16, #tpu.memory_space<vmem>>, %arg9: memref<16x32xbf16, #tpu.memory_space<vmem>>) attributes {dimension_semantics = [#tpu.dimension_semantics<parallel>], iteration_bounds = array<i64: 1>, scalar_prefetch = 0 : i64, scratch_operands = 0 : i64, tpu.core_type = #tpu.core_type<tc>, window_params = [{transform_indices = @transform_0, window_bounds = array<i64: 16, 32>}, {pipeline_mode = #tpu.pipeline_mode<synchronous>, transform_indices = @transform_1, window_bounds = array<i64: 1, 32>}, {pipeline_mode = #tpu.pipeline_mode<synchronous>, transform_indices = @transform_2, window_bounds = array<i64: 1, 32>}, {pipeline_mode = #tpu.pipeline_mode<synchronous>, transform_indices = @transform_3, window_bounds = array<i64: 32, 32>}, {pipeline_mode = #tpu.pipeline_mode<synchronous>, transform_indices = @transform_4, window_bounds = array<i64: 32, 32>}, {pipeline_mode = #tpu.pipeline_mode<synchronous>, transform_indices = @transform_5, window_bounds = array<i64: 32, 32>}, {transform_indices = @transform_6, window_bounds = array<i64: 16, 32>}, {transform_indices = @transform_7, window_bounds = array<i64: 16, 32>}, {transform_indices = @transform_8, window_bounds = array<i64: 16, 32>}]} {
    %c0 = arith.constant 0 : index
    %c0_0 = arith.constant 0 : index
    %0 = vector.load %arg1[%c0, %c0_0] : memref<16x32xbf16, #tpu.memory_space<vmem>>, vector<16x32xbf16>
    %c0_1 = arith.constant 0 : index
    %c0_2 = arith.constant 0 : index
    %1 = vector.load %arg2[%c0_1, %c0_2] : memref<1x32xf32, #tpu.memory_space<vmem>>, vector<1x32xf32>
    %c0_3 = arith.constant 0 : index
    %c0_4 = arith.constant 0 : index
    %2 = vector.load %arg3[%c0_3, %c0_4] : memref<1x32xf32, #tpu.memory_space<vmem>>, vector<1x32xf32>
    %3 = arith.extf %0 : vector<16x32xbf16> to vector<16x32xf32>
    %cst = arith.constant dense<0.000000e+00> : vector<16xf32>
    %4 = vector.multi_reduction <add>, %3, %cst [1] : vector<16x32xf32> to vector<16xf32>
    %5 = vector.shape_cast %4 : vector<16xf32> to vector<16x1xf32>
    %cst_5 = arith.constant 3.200000e+01 : f32
    %6 = vector.broadcast %cst_5 : f32 to vector<16x1xf32>
    %7 = arith.divf %5, %6 : vector<16x1xf32>
    %8 = vector.broadcast %7 : vector<16x1xf32> to vector<16x32xf32>
    %9 = arith.subf %3, %8 : vector<16x32xf32>
    %10 = arith.mulf %9, %9 : vector<16x32xf32>
    %cst_6 = arith.constant dense<0.000000e+00> : vector<16xf32>
    %11 = vector.multi_reduction <add>, %10, %cst_6 [1] : vector<16x32xf32> to vector<16xf32>
    %12 = vector.shape_cast %11 : vector<16xf32> to vector<16x1xf32>
    %cst_7 = arith.constant 3.200000e+01 : f32
    %13 = vector.broadcast %cst_7 : f32 to vector<16x1xf32>
    %14 = arith.divf %12, %13 : vector<16x1xf32>
    %cst_8 = arith.constant 9.99999974E-6 : f32
    %15 = vector.broadcast %cst_8 : f32 to vector<16x1xf32>
    %16 = arith.addf %14, %15 : vector<16x1xf32>
    %17 = math.rsqrt %16 : vector<16x1xf32>
    %18 = vector.broadcast %17 : vector<16x1xf32> to vector<16x32xf32>
    %19 = arith.mulf %9, %18 : vector<16x32xf32>
    %20 = vector.broadcast %1 : vector<1x32xf32> to vector<16x32xf32>
    %21 = arith.mulf %19, %20 : vector<16x32xf32>
    %22 = vector.broadcast %2 : vector<1x32xf32> to vector<16x32xf32>
    %23 = arith.addf %21, %22 : vector<16x32xf32>
    %24 = arith.truncf %23 : vector<16x32xf32> to vector<16x32xbf16>
    %c0_9 = arith.constant 0 : index
    %c0_10 = arith.constant 0 : index
    %25 = vector.load %arg4[%c0_9, %c0_10] : memref<32x32xbf16, #tpu.memory_space<vmem>>, vector<32x32xbf16>
    %cst_11 = arith.constant dense<0.000000e+00> : vector<16x32xf32>
    %26 = tpu.matmul %24, %25, %cst_11 {dimension_numbers = #tpu.dot_dimension_numbers<[1], [0], [0], [1], [0, 0, 1, 1], [], []>} : vector<16x32xbf16>, vector<32x32xbf16>, vector<16x32xf32> -> vector<16x32xf32>
    %27 = arith.truncf %26 : vector<16x32xf32> to vector<16x32xbf16>
    %c0_12 = arith.constant 0 : index
    %c0_13 = arith.constant 0 : index
    %28 = vector.load %arg7[%c0_12, %c0_13] : memref<16x32xbf16, #tpu.memory_space<vmem>>, vector<16x32xbf16>
    tpu.vector_store %arg7[%c0_12, %c0_13], %27 {strides = array<i32>} : memref<16x32xbf16, #tpu.memory_space<vmem>>, vector<16x32xbf16>,
    %c0_14 = arith.constant 0 : index
    %c0_15 = arith.constant 0 : index
    %29 = vector.load %arg5[%c0_14, %c0_15] : memref<32x32xbf16, #tpu.memory_space<vmem>>, vector<32x32xbf16>
    %cst_16 = arith.constant dense<0.000000e+00> : vector<16x32xf32>
    %30 = tpu.matmul %24, %29, %cst_16 {dimension_numbers = #tpu.dot_dimension_numbers<[1], [0], [0], [1], [0, 0, 1, 1], [], []>} : vector<16x32xbf16>, vector<32x32xbf16>, vector<16x32xf32> -> vector<16x32xf32>
    %31 = arith.truncf %30 : vector<16x32xf32> to vector<16x32xbf16>
    %c0_17 = arith.constant 0 : index
    %c0_18 = arith.constant 0 : index
    %32 = vector.load %arg8[%c0_17, %c0_18] : memref<16x32xbf16, #tpu.memory_space<vmem>>, vector<16x32xbf16>
    tpu.vector_store %arg8[%c0_17, %c0_18], %31 {strides = array<i32>} : memref<16x32xbf16, #tpu.memory_space<vmem>>, vector<16x32xbf16>,
    %c0_19 = arith.constant 0 : index
    %c0_20 = arith.constant 0 : index
    %33 = vector.load %arg6[%c0_19, %c0_20] : memref<32x32xbf16, #tpu.memory_space<vmem>>, vector<32x32xbf16>
    %cst_21 = arith.constant dense<0.000000e+00> : vector<16x32xf32>
    %34 = tpu.matmul %24, %33, %cst_21 {dimension_numbers = #tpu.dot_dimension_numbers<[1], [0], [0], [1], [0, 0, 1, 1], [], []>} : vector<16x32xbf16>, vector<32x32xbf16>, vector<16x32xf32> -> vector<16x32xf32>
    %35 = arith.truncf %34 : vector<16x32xf32> to vector<16x32xbf16>
    %c0_22 = arith.constant 0 : index
    %c0_23 = arith.constant 0 : index
    %36 = vector.load %arg9[%c0_22, %c0_23] : memref<16x32xbf16, #tpu.memory_space<vmem>>, vector<16x32xbf16>
    tpu.vector_store %arg9[%c0_22, %c0_23], %35 {strides = array<i32>} : memref<16x32xbf16, #tpu.memory_space<vmem>>, vector<16x32xbf16>,
    return
  }
  func.func @transform_0(%arg0: i32) -> (i32, i32) {
    %c0_i32 = arith.constant 0 : i32
    %c0_i32_0 = arith.constant 0 : i32
    return %arg0, %c0_i32 : i32, i32
  }
  func.func @transform_1(%arg0: i32) -> (i32, i32) {
    %c0_i32 = arith.constant 0 : i32
    %c0_i32_0 = arith.constant 0 : i32
    %c0_i32_1 = arith.constant 0 : i32
    return %c0_i32, %c0_i32_0 : i32, i32
  }
  func.func @transform_2(%arg0: i32) -> (i32, i32) {
    %c0_i32 = arith.constant 0 : i32
    %c0_i32_0 = arith.constant 0 : i32
    %c0_i32_1 = arith.constant 0 : i32
    return %c0_i32, %c0_i32_0 : i32, i32
  }
  func.func @transform_3(%arg0: i32) -> (i32, i32) {
    %c0_i32 = arith.constant 0 : i32
    %c0_i32_0 = arith.constant 0 : i32
    %c0_i32_1 = arith.constant 0 : i32
    return %c0_i32, %c0_i32_0 : i32, i32
  }
  func.func @transform_4(%arg0: i32) -> (i32, i32) {
    %c0_i32 = arith.constant 0 : i32
    %c0_i32_0 = arith.constant 0 : i32
    %c0_i32_1 = arith.constant 0 : i32
    return %c0_i32, %c0_i32_0 : i32, i32
  }
  func.func @transform_5(%arg0: i32) -> (i32, i32) {
    %c0_i32 = arith.constant 0 : i32
    %c0_i32_0 = arith.constant 0 : i32
    %c0_i32_1 = arith.constant 0 : i32
    return %c0_i32, %c0_i32_0 : i32, i32
  }
  func.func @transform_6(%arg0: i32) -> (i32, i32) {
    %c0_i32 = arith.constant 0 : i32
    %c0_i32_0 = arith.constant 0 : i32
    return %arg0, %c0_i32 : i32, i32
  }
  func.func @transform_7(%arg0: i32) -> (i32, i32) {
    %c0_i32 = arith.constant 0 : i32
    %c0_i32_0 = arith.constant 0 : i32
    return %arg0, %c0_i32 : i32, i32
  }
  func.func @transform_8(%arg0: i32) -> (i32, i32) {
    %c0_i32 = arith.constant 0 : i32
    %c0_i32_0 = arith.constant 0 : i32
    return %arg0, %c0_i32 : i32, i32
  }
}

module attributes {stable_mosaic.version = 11 : i64} {
  func.func @_attention_kernel(%arg0: i32, %arg1: memref<1x8x32xbf16, #tpu.memory_space<vmem>>, %arg2: memref<1x8x32xbf16, #tpu.memory_space<vmem>>, %arg3: memref<1x8x32xbf16, #tpu.memory_space<vmem>>, %arg4: memref<1x8x32xbf16, #tpu.memory_space<vmem>>) attributes {dimension_semantics = [#tpu.dimension_semantics<parallel>], iteration_bounds = array<i64: 2>, scalar_prefetch = 0 : i64, scratch_operands = 0 : i64, tpu.core_type = #tpu.core_type<tc>, window_params = [{transform_indices = @transform_0, window_bounds = array<i64: 1, 8, 32>}, {transform_indices = @transform_1, window_bounds = array<i64: 1, 8, 32>}, {transform_indices = @transform_2, window_bounds = array<i64: 1, 8, 32>}, {transform_indices = @transform_3, window_bounds = array<i64: 1, 8, 32>}]} {
    %c0 = arith.constant 0 : index
    %c0_0 = arith.constant 0 : index
    %c0_1 = arith.constant 0 : index
    %0 = vector.load %arg1[%c0, %c0_0, %c0_1] : memref<1x8x32xbf16, #tpu.memory_space<vmem>>, vector<1x8x32xbf16>
    %1 = vector.shape_cast %0 : vector<1x8x32xbf16> to vector<8x32xbf16>
    %c0_2 = arith.constant 0 : index
    %c0_3 = arith.constant 0 : index
    %c0_4 = arith.constant 0 : index
    %2 = vector.load %arg2[%c0_2, %c0_3, %c0_4] : memref<1x8x32xbf16, #tpu.memory_space<vmem>>, vector<1x8x32xbf16>
    %3 = vector.shape_cast %2 : vector<1x8x32xbf16> to vector<8x32xbf16>
    %c0_5 = arith.constant 0 : index
    %c0_6 = arith.constant 0 : index
    %c0_7 = arith.constant 0 : index
    %4 = vector.load %arg3[%c0_5, %c0_6, %c0_7] : memref<1x8x32xbf16, #tpu.memory_space<vmem>>, vector<1x8x32xbf16>
    %5 = vector.shape_cast %4 : vector<1x8x32xbf16> to vector<8x32xbf16>
    %6 = vector.extract_strided_slice %1 {offsets = [0, 0], sizes = [8, 16], strides = [1, 1]} : vector<8x32xbf16> to vector<8x16xbf16>
    %7 = vector.extract_strided_slice %3 {offsets = [0, 0], sizes = [8, 16], strides = [1, 1]} : vector<8x32xbf16> to vector<8x16xbf16>
    %8 = vector.extract_strided_slice %5 {offsets = [0, 0], sizes = [8, 16], strides = [1, 1]} : vector<8x32xbf16> to vector<8x16xbf16>
    %cst = arith.constant dense<0.000000e+00> : vector<8x8xf32>
    %9 = tpu.matmul %6, %7, %cst {dimension_numbers = #tpu.dot_dimension_numbers<[1], [1], [0], [0], [0, 0, 1, 0], [], []>} : vector<8x16xbf16>, vector<8x16xbf16>, vector<8x8xf32> -> vector<8x8xf32>
    %cst_8 = arith.constant 2.500000e-01 : f32
    %10 = vector.broadcast %cst_8 : f32 to vector<8x8xf32>
    %11 = arith.mulf %9, %10 : vector<8x8xf32>
    %cst_9 = arith.constant dense<0xFF800000> : vector<8xf32>
    %12 = vector.multi_reduction <maximumf>, %11, %cst_9 [1] : vector<8x8xf32> to vector<8xf32>
    %13 = vector.shape_cast %12 : vector<8xf32> to vector<8x1xf32>
    %14 = vector.broadcast %13 : vector<8x1xf32> to vector<8x8xf32>
    %15 = arith.subf %11, %14 : vector<8x8xf32>
    %16 = math.exp %15 : vector<8x8xf32>
    %cst_10 = arith.constant dense<0.000000e+00> : vector<8xf32>
    %17 = vector.multi_reduction <add>, %16, %cst_10 [1] : vector<8x8xf32> to vector<8xf32>
    %18 = vector.shape_cast %17 : vector<8xf32> to vector<8x1xf32>
    %19 = tpu.reciprocal %18 {approx = true} : vector<8x1xf32> -> vector<8x1xf32>
    %20 = vector.broadcast %19 : vector<8x1xf32> to vector<8x8xf32>
    %21 = arith.mulf %16, %20 : vector<8x8xf32>
    %22 = arith.truncf %21 : vector<8x8xf32> to vector<8x8xbf16>
    %cst_11 = arith.constant dense<0.000000e+00> : vector<8x16xf32>
    %23 = tpu.matmul %22, %8, %cst_11 {dimension_numbers = #tpu.dot_dimension_numbers<[1], [0], [0], [1], [0, 0, 1, 1], [], []>} : vector<8x8xbf16>, vector<8x16xbf16>, vector<8x16xf32> -> vector<8x16xf32>
    %24 = arith.truncf %23 : vector<8x16xf32> to vector<8x16xbf16>
    %c0_12 = arith.constant 0 : index
    %c0_13 = arith.constant 0 : index
    %c0_14 = arith.constant 0 : index
    %25 = vector.load %arg4[%c0_12, %c0_13, %c0_14] : memref<1x8x32xbf16, #tpu.memory_space<vmem>>, vector<1x8x16xbf16>
    %26 = vector.shape_cast %25 : vector<1x8x16xbf16> to vector<8x16xbf16>
    %27 = vector.shape_cast %24 : vector<8x16xbf16> to vector<1x8x16xbf16>
    tpu.vector_store %arg4[%c0_12, %c0_13, %c0_14], %27 {strides = array<i32>} : memref<1x8x32xbf16, #tpu.memory_space<vmem>>, vector<1x8x16xbf16>,
    %28 = vector.extract_strided_slice %1 {offsets = [0, 16], sizes = [8, 16], strides = [1, 1]} : vector<8x32xbf16> to vector<8x16xbf16>
    %29 = vector.extract_strided_slice %3 {offsets = [0, 16], sizes = [8, 16], strides = [1, 1]} : vector<8x32xbf16> to vector<8x16xbf16>
    %30 = vector.extract_strided_slice %5 {offsets = [0, 16], sizes = [8, 16], strides = [1, 1]} : vector<8x32xbf16> to vector<8x16xbf16>
    %cst_15 = arith.constant dense<0.000000e+00> : vector<8x8xf32>
    %31 = tpu.matmul %28, %29, %cst_15 {dimension_numbers = #tpu.dot_dimension_numbers<[1], [1], [0], [0], [0, 0, 1, 0], [], []>} : vector<8x16xbf16>, vector<8x16xbf16>, vector<8x8xf32> -> vector<8x8xf32>
    %cst_16 = arith.constant 2.500000e-01 : f32
    %32 = vector.broadcast %cst_16 : f32 to vector<8x8xf32>
    %33 = arith.mulf %31, %32 : vector<8x8xf32>
    %cst_17 = arith.constant dense<0xFF800000> : vector<8xf32>
    %34 = vector.multi_reduction <maximumf>, %33, %cst_17 [1] : vector<8x8xf32> to vector<8xf32>
    %35 = vector.shape_cast %34 : vector<8xf32> to vector<8x1xf32>
    %36 = vector.broadcast %35 : vector<8x1xf32> to vector<8x8xf32>
    %37 = arith.subf %33, %36 : vector<8x8xf32>
    %38 = math.exp %37 : vector<8x8xf32>
    %cst_18 = arith.constant dense<0.000000e+00> : vector<8xf32>
    %39 = vector.multi_reduction <add>, %38, %cst_18 [1] : vector<8x8xf32> to vector<8xf32>
    %40 = vector.shape_cast %39 : vector<8xf32> to vector<8x1xf32>
    %41 = tpu.reciprocal %40 {approx = true} : vector<8x1xf32> -> vector<8x1xf32>
    %42 = vector.broadcast %41 : vector<8x1xf32> to vector<8x8xf32>
    %43 = arith.mulf %38, %42 : vector<8x8xf32>
    %44 = arith.truncf %43 : vector<8x8xf32> to vector<8x8xbf16>
    %cst_19 = arith.constant dense<0.000000e+00> : vector<8x16xf32>
    %45 = tpu.matmul %44, %30, %cst_19 {dimension_numbers = #tpu.dot_dimension_numbers<[1], [0], [0], [1], [0, 0, 1, 1], [], []>} : vector<8x8xbf16>, vector<8x16xbf16>, vector<8x16xf32> -> vector<8x16xf32>
    %46 = arith.truncf %45 : vector<8x16xf32> to vector<8x16xbf16>
    %c0_20 = arith.constant 0 : index
    %c0_21 = arith.constant 0 : index
    %c16 = arith.constant 16 : index
    %47 = vector.load %arg4[%c0_20, %c0_21, %c16] : memref<1x8x32xbf16, #tpu.memory_space<vmem>>, vector<1x8x16xbf16>
    %48 = vector.shape_cast %47 : vector<1x8x16xbf16> to vector<8x16xbf16>
    %49 = vector.shape_cast %46 : vector<8x16xbf16> to vector<1x8x16xbf16>
    tpu.vector_store %arg4[%c0_20, %c0_21, %c16], %49 {strides = array<i32>} : memref<1x8x32xbf16, #tpu.memory_space<vmem>>, vector<1x8x16xbf16>,
    return
  }
  func.func @transform_0(%arg0: i32) -> (i32, i32, i32) {
    %c0_i32 = arith.constant 0 : i32
    %c0_i32_0 = arith.constant 0 : i32
    %c0_i32_1 = arith.constant 0 : i32
    return %arg0, %c0_i32, %c0_i32_0 : i32, i32, i32
  }
  func.func @transform_1(%arg0: i32) -> (i32, i32, i32) {
    %c0_i32 = arith.constant 0 : i32
    %c0_i32_0 = arith.constant 0 : i32
    %c0_i32_1 = arith.constant 0 : i32
    return %arg0, %c0_i32, %c0_i32_0 : i32, i32, i32
  }
  func.func @transform_2(%arg0: i32) -> (i32, i32, i32) {
    %c0_i32 = arith.constant 0 : i32
    %c0_i32_0 = arith.constant 0 : i32
    %c0_i32_1 = arith.constant 0 : i32
    return %arg0, %c0_i32, %c0_i32_0 : i32, i32, i32
  }
  func.func @transform_3(%arg0: i32) -> (i32, i32, i32) {
    %c0_i32 = arith.constant 0 : i32
    %c0_i32_0 = arith.constant 0 : i32
    %c0_i32_1 = arith.constant 0 : i32
    return %arg0, %c0_i32, %c0_i32_0 : i32, i32, i32
  }
}

module attributes {stable_mosaic.version = 11 : i64} {
  func.func @_ln_geglu_kernel(%arg0: i32, %arg1: memref<16x32xbf16, #tpu.memory_space<vmem>>, %arg2: memref<1x32xf32, #tpu.memory_space<vmem>>, %arg3: memref<1x32xf32, #tpu.memory_space<vmem>>, %arg4: memref<32x128xbf16, #tpu.memory_space<vmem>>, %arg5: memref<32x128xbf16, #tpu.memory_space<vmem>>, %arg6: memref<1x128xf32, #tpu.memory_space<vmem>>, %arg7: memref<1x128xf32, #tpu.memory_space<vmem>>, %arg8: memref<16x128xbf16, #tpu.memory_space<vmem>>) attributes {dimension_semantics = [#tpu.dimension_semantics<parallel>], iteration_bounds = array<i64: 1>, scalar_prefetch = 0 : i64, scratch_operands = 0 : i64, tpu.core_type = #tpu.core_type<tc>, window_params = [{transform_indices = @transform_0, window_bounds = array<i64: 16, 32>}, {pipeline_mode = #tpu.pipeline_mode<synchronous>, transform_indices = @transform_1, window_bounds = array<i64: 1, 32>}, {pipeline_mode = #tpu.pipeline_mode<synchronous>, transform_indices = @transform_2, window_bounds = array<i64: 1, 32>}, {pipeline_mode = #tpu.pipeline_mode<synchronous>, transform_indices = @transform_3, window_bounds = array<i64: 32, 128>}, {pipeline_mode = #tpu.pipeline_mode<synchronous>, transform_indices = @transform_4, window_bounds = array<i64: 32, 128>}, {pipeline_mode = #tpu.pipeline_mode<synchronous>, transform_indices = @transform_5, window_bounds = array<i64: 1, 128>}, {pipeline_mode = #tpu.pipeline_mode<synchronous>, transform_indices = @transform_6, window_bounds = array<i64: 1, 128>}, {transform_indices = @transform_7, window_bounds = array<i64: 16, 128>}]} {
    %c0 = arith.constant 0 : index
    %c0_0 = arith.constant 0 : index
    %0 = vector.load %arg1[%c0, %c0_0] : memref<16x32xbf16, #tpu.memory_space<vmem>>, vector<16x32xbf16>
    %c0_1 = arith.constant 0 : index
    %c0_2 = arith.constant 0 : index
    %1 = vector.load %arg2[%c0_1, %c0_2] : memref<1x32xf32, #tpu.memory_space<vmem>>, vector<1x32xf32>
    %c0_3 = arith.constant 0 : index
    %c0_4 = arith.constant 0 : index
    %2 = vector.load %arg3[%c0_3, %c0_4] : memref<1x32xf32, #tpu.memory_space<vmem>>, vector<1x32xf32>
    %3 = arith.extf %0 : vector<16x32xbf16> to vector<16x32xf32>
    %cst = arith.constant dense<0.000000e+00> : vector<16xf32>
    %4 = vector.multi_reduction <add>, %3, %cst [1] : vector<16x32xf32> to vector<16xf32>
    %5 = vector.shape_cast %4 : vector<16xf32> to vector<16x1xf32>
    %cst_5 = arith.constant 3.200000e+01 : f32
    %6 = vector.broadcast %cst_5 : f32 to vector<16x1xf32>
    %7 = arith.divf %5, %6 : vector<16x1xf32>
    %8 = vector.broadcast %7 : vector<16x1xf32> to vector<16x32xf32>
    %9 = arith.subf %3, %8 : vector<16x32xf32>
    %10 = arith.mulf %9, %9 : vector<16x32xf32>
    %cst_6 = arith.constant dense<0.000000e+00> : vector<16xf32>
    %11 = vector.multi_reduction <add>, %10, %cst_6 [1] : vector<16x32xf32> to vector<16xf32>
    %12 = vector.shape_cast %11 : vector<16xf32> to vector<16x1xf32>
    %cst_7 = arith.constant 3.200000e+01 : f32
    %13 = vector.broadcast %cst_7 : f32 to vector<16x1xf32>
    %14 = arith.divf %12, %13 : vector<16x1xf32>
    %cst_8 = arith.constant 9.99999974E-6 : f32
    %15 = vector.broadcast %cst_8 : f32 to vector<16x1xf32>
    %16 = arith.addf %14, %15 : vector<16x1xf32>
    %17 = math.rsqrt %16 : vector<16x1xf32>
    %18 = vector.broadcast %17 : vector<16x1xf32> to vector<16x32xf32>
    %19 = arith.mulf %9, %18 : vector<16x32xf32>
    %20 = vector.broadcast %1 : vector<1x32xf32> to vector<16x32xf32>
    %21 = arith.mulf %19, %20 : vector<16x32xf32>
    %22 = vector.broadcast %2 : vector<1x32xf32> to vector<16x32xf32>
    %23 = arith.addf %21, %22 : vector<16x32xf32>
    %24 = arith.truncf %23 : vector<16x32xf32> to vector<16x32xbf16>
    %c0_9 = arith.constant 0 : index
    %c0_10 = arith.constant 0 : index
    %25 = vector.load %arg4[%c0_9, %c0_10] : memref<32x128xbf16, #tpu.memory_space<vmem>>, vector<32x128xbf16>
    %cst_11 = arith.constant dense<0.000000e+00> : vector<16x128xf32>
    %26 = tpu.matmul %24, %25, %cst_11 {dimension_numbers = #tpu.dot_dimension_numbers<[1], [0], [0], [1], [0, 0, 1, 1], [], []>} : vector<16x32xbf16>, vector<32x128xbf16>, vector<16x128xf32> -> vector<16x128xf32>
    %c0_12 = arith.constant 0 : index
    %c0_13 = arith.constant 0 : index
    %27 = vector.load %arg6[%c0_12, %c0_13] : memref<1x128xf32, #tpu.memory_space<vmem>>, vector<1x128xf32>
    %28 = vector.broadcast %27 : vector<1x128xf32> to vector<16x128xf32>
    %29 = arith.addf %26, %28 : vector<16x128xf32>
    %c0_14 = arith.constant 0 : index
    %c0_15 = arith.constant 0 : index
    %30 = vector.load %arg5[%c0_14, %c0_15] : memref<32x128xbf16, #tpu.memory_space<vmem>>, vector<32x128xbf16>
    %cst_16 = arith.constant dense<0.000000e+00> : vector<16x128xf32>
    %31 = tpu.matmul %24, %30, %cst_16 {dimension_numbers = #tpu.dot_dimension_numbers<[1], [0], [0], [1], [0, 0, 1, 1], [], []>} : vector<16x32xbf16>, vector<32x128xbf16>, vector<16x128xf32> -> vector<16x128xf32>
    %c0_17 = arith.constant 0 : index
    %c0_18 = arith.constant 0 : index
    %32 = vector.load %arg7[%c0_17, %c0_18] : memref<1x128xf32, #tpu.memory_space<vmem>>, vector<1x128xf32>
    %33 = vector.broadcast %32 : vector<1x128xf32> to vector<16x128xf32>
    %34 = arith.addf %31, %33 : vector<16x128xf32>
    %cst_19 = arith.constant 5.000000e-01 : f32
    %35 = vector.broadcast %cst_19 : f32 to vector<16x128xf32>
    %36 = arith.mulf %35, %34 : vector<16x128xf32>
    %cst_20 = arith.constant 4.471500e-02 : f32
    %37 = vector.broadcast %cst_20 : f32 to vector<16x128xf32>
    %38 = arith.mulf %37, %34 : vector<16x128xf32>
    %39 = arith.mulf %38, %34 : vector<16x128xf32>
    %40 = arith.mulf %39, %34 : vector<16x128xf32>
    %41 = arith.addf %34, %40 : vector<16x128xf32>
    %cst_21 = arith.constant 0.797884583 : f32
    %42 = vector.broadcast %cst_21 : f32 to vector<16x128xf32>
    %43 = arith.mulf %42, %41 : vector<16x128xf32>
    %44 = math.tanh %43 : vector<16x128xf32>
    %cst_22 = arith.constant 1.000000e+00 : f32
    %45 = vector.broadcast %cst_22 : f32 to vector<16x128xf32>
    %46 = arith.addf %45, %44 : vector<16x128xf32>
    %47 = arith.mulf %36, %46 : vector<16x128xf32>
    %48 = arith.mulf %29, %47 : vector<16x128xf32>
    %49 = arith.truncf %48 : vector<16x128xf32> to vector<16x128xbf16>
    %c0_23 = arith.constant 0 : index
    %c0_24 = arith.constant 0 : index
    %50 = vector.load %arg8[%c0_23, %c0_24] : memref<16x128xbf16, #tpu.memory_space<vmem>>, vector<16x128xbf16>
    tpu.vector_store %arg8[%c0_23, %c0_24], %49 {strides = array<i32>} : memref<16x128xbf16, #tpu.memory_space<vmem>>, vector<16x128xbf16>,
    return
  }
  func.func @transform_0(%arg0: i32) -> (i32, i32) {
    %c0_i32 = arith.constant 0 : i32
    %c0_i32_0 = arith.constant 0 : i32
    return %arg0, %c0_i32 : i32, i32
  }
  func.func @transform_1(%arg0: i32) -> (i32, i32) {
    %c0_i32 = arith.constant 0 : i32
    %c0_i32_0 = arith.constant 0 : i32
    %c0_i32_1 = arith.constant 0 : i32
    return %c0_i32, %c0_i32_0 : i32, i32
  }
  func.func @transform_2(%arg0: i32) -> (i32, i32) {
    %c0_i32 = arith.constant 0 : i32
    %c0_i32_0 = arith.constant 0 : i32
    %c0_i32_1 = arith.constant 0 : i32
    return %c0_i32, %c0_i32_0 : i32, i32
  }
  func.func @transform_3(%arg0: i32) -> (i32, i32) {
    %c0_i32 = arith.constant 0 : i32
    %c0_i32_0 = arith.constant 0 : i32
    %c0_i32_1 = arith.constant 0 : i32
    return %c0_i32, %c0_i32_0 : i32, i32
  }
  func.func @transform_4(%arg0: i32) -> (i32, i32) {
    %c0_i32 = arith.constant 0 : i32
    %c0_i32_0 = arith.constant 0 : i32
    %c0_i32_1 = arith.constant 0 : i32
    return %c0_i32, %c0_i32_0 : i32, i32
  }
  func.func @transform_5(%arg0: i32) -> (i32, i32) {
    %c0_i32 = arith.constant 0 : i32
    %c0_i32_0 = arith.constant 0 : i32
    %c0_i32_1 = arith.constant 0 : i32
    return %c0_i32, %c0_i32_0 : i32, i32
  }
  func.func @transform_6(%arg0: i32) -> (i32, i32) {
    %c0_i32 = arith.constant 0 : i32
    %c0_i32_0 = arith.constant 0 : i32
    %c0_i32_1 = arith.constant 0 : i32
    return %c0_i32, %c0_i32_0 : i32, i32
  }
  func.func @transform_7(%arg0: i32) -> (i32, i32) {
    %c0_i32 = arith.constant 0 : i32
    %c0_i32_0 = arith.constant 0 : i32
    return %arg0, %c0_i32 : i32, i32
  }
}

module attributes {stable_mosaic.version = 11 : i64} {
  func.func @_proj_residual_kernel(%arg0: i32, %arg1: memref<16x128xbf16, #tpu.memory_space<vmem>>, %arg2: memref<16x32xbf16, #tpu.memory_space<vmem>>, %arg3: memref<128x32xbf16, #tpu.memory_space<vmem>>, %arg4: memref<1x32xf32, #tpu.memory_space<vmem>>, %arg5: memref<16x32xbf16, #tpu.memory_space<vmem>>) attributes {dimension_semantics = [#tpu.dimension_semantics<parallel>], iteration_bounds = array<i64: 1>, scalar_prefetch = 0 : i64, scratch_operands = 0 : i64, tpu.core_type = #tpu.core_type<tc>, window_params = [{transform_indices = @transform_0, window_bounds = array<i64: 16, 128>}, {transform_indices = @transform_1, window_bounds = array<i64: 16, 32>}, {pipeline_mode = #tpu.pipeline_mode<synchronous>, transform_indices = @transform_2, window_bounds = array<i64: 128, 32>}, {pipeline_mode = #tpu.pipeline_mode<synchronous>, transform_indices = @transform_3, window_bounds = array<i64: 1, 32>}, {transform_indices = @transform_4, window_bounds = array<i64: 16, 32>}]} {
    %c0 = arith.constant 0 : index
    %c0_0 = arith.constant 0 : index
    %0 = vector.load %arg1[%c0, %c0_0] : memref<16x128xbf16, #tpu.memory_space<vmem>>, vector<16x128xbf16>
    %c0_1 = arith.constant 0 : index
    %c0_2 = arith.constant 0 : index
    %1 = vector.load %arg3[%c0_1, %c0_2] : memref<128x32xbf16, #tpu.memory_space<vmem>>, vector<128x32xbf16>
    %cst = arith.constant dense<0.000000e+00> : vector<16x32xf32>
    %2 = tpu.matmul %0, %1, %cst {dimension_numbers = #tpu.dot_dimension_numbers<[1], [0], [0], [1], [0, 0, 1, 1], [], []>} : vector<16x128xbf16>, vector<128x32xbf16>, vector<16x32xf32> -> vector<16x32xf32>
    %c0_3 = arith.constant 0 : index
    %c0_4 = arith.constant 0 : index
    %3 = vector.load %arg4[%c0_3, %c0_4] : memref<1x32xf32, #tpu.memory_space<vmem>>, vector<1x32xf32>
    %4 = vector.broadcast %3 : vector<1x32xf32> to vector<16x32xf32>
    %5 = arith.addf %2, %4 : vector<16x32xf32>
    %c0_5 = arith.constant 0 : index
    %c0_6 = arith.constant 0 : index
    %6 = vector.load %arg2[%c0_5, %c0_6] : memref<16x32xbf16, #tpu.memory_space<vmem>>, vector<16x32xbf16>
    %7 = arith.extf %6 : vector<16x32xbf16> to vector<16x32xf32>
    %8 = arith.addf %5, %7 : vector<16x32xf32>
    %9 = arith.truncf %8 : vector<16x32xf32> to vector<16x32xbf16>
    %c0_7 = arith.constant 0 : index
    %c0_8 = arith.constant 0 : index
    %10 = vector.load %arg5[%c0_7, %c0_8] : memref<16x32xbf16, #tpu.memory_space<vmem>>, vector<16x32xbf16>
    tpu.vector_store %arg5[%c0_7, %c0_8], %9 {strides = array<i32>} : memref<16x32xbf16, #tpu.memory_space<vmem>>, vector<16x32xbf16>,
    return
  }
  func.func @transform_0(%arg0: i32) -> (i32, i32) {
    %c0_i32 = arith.constant 0 : i32
    %c0_i32_0 = arith.constant 0 : i32
    return %arg0, %c0_i32 : i32, i32
  }
  func.func @transform_1(%arg0: i32) -> (i32, i32) {
    %c0_i32 = arith.constant 0 : i32
    %c0_i32_0 = arith.constant 0 : i32
    return %arg0, %c0_i32 : i32, i32
  }
  func.func @transform_2(%arg0: i32) -> (i32, i32) {
    %c0_i32 = arith.constant 0 : i32
    %c0_i32_0 = arith.constant 0 : i32
    %c0_i32_1 = arith.constant 0 : i32
    return %c0_i32, %c0_i32_0 : i32, i32
  }
  func.func @transform_3(%arg0: i32) -> (i32, i32) {
    %c0_i32 = arith.constant 0 : i32
    %c0_i32_0 = arith.constant 0 : i32
    %c0_i32_1 = arith.constant 0 : i32
    return %c0_i32, %c0_i32_0 : i32, i32
  }
  func.func @transform_4(%arg0: i32) -> (i32, i32) {
    %c0_i32 = arith.constant 0 : i32
    %c0_i32_0 = arith.constant 0 : i32
    return %arg0, %c0_i32 : i32, i32
  }
}

module attributes {stable_mosaic.version = 11 : i64} {
  func.func @_ln_proj_kernel(%arg0: i32, %arg1: memref<16x32xbf16, #tpu.memory_space<vmem>>, %arg2: memref<1x32xf32, #tpu.memory_space<vmem>>, %arg3: memref<1x32xf32, #tpu.memory_space<vmem>>, %arg4: memref<32x8xbf16, #tpu.memory_space<vmem>>, %arg5: memref<16x8xf32, #tpu.memory_space<vmem>>) attributes {dimension_semantics = [#tpu.dimension_semantics<parallel>], iteration_bounds = array<i64: 1>, scalar_prefetch = 0 : i64, scratch_operands = 0 : i64, tpu.core_type = #tpu.core_type<tc>, window_params = [{transform_indices = @transform_0, window_bounds = array<i64: 16, 32>}, {pipeline_mode = #tpu.pipeline_mode<synchronous>, transform_indices = @transform_1, window_bounds = array<i64: 1, 32>}, {pipeline_mode = #tpu.pipeline_mode<synchronous>, transform_indices = @transform_2, window_bounds = array<i64: 1, 32>}, {pipeline_mode = #tpu.pipeline_mode<synchronous>, transform_indices = @transform_3, window_bounds = array<i64: 32, 8>}, {transform_indices = @transform_4, window_bounds = array<i64: 16, 8>}]} {
    %c0 = arith.constant 0 : index
    %c0_0 = arith.constant 0 : index
    %0 = vector.load %arg1[%c0, %c0_0] : memref<16x32xbf16, #tpu.memory_space<vmem>>, vector<16x32xbf16>
    %c0_1 = arith.constant 0 : index
    %c0_2 = arith.constant 0 : index
    %1 = vector.load %arg2[%c0_1, %c0_2] : memref<1x32xf32, #tpu.memory_space<vmem>>, vector<1x32xf32>
    %c0_3 = arith.constant 0 : index
    %c0_4 = arith.constant 0 : index
    %2 = vector.load %arg3[%c0_3, %c0_4] : memref<1x32xf32, #tpu.memory_space<vmem>>, vector<1x32xf32>
    %3 = arith.extf %0 : vector<16x32xbf16> to vector<16x32xf32>
    %cst = arith.constant dense<0.000000e+00> : vector<16xf32>
    %4 = vector.multi_reduction <add>, %3, %cst [1] : vector<16x32xf32> to vector<16xf32>
    %5 = vector.shape_cast %4 : vector<16xf32> to vector<16x1xf32>
    %cst_5 = arith.constant 3.200000e+01 : f32
    %6 = vector.broadcast %cst_5 : f32 to vector<16x1xf32>
    %7 = arith.divf %5, %6 : vector<16x1xf32>
    %8 = vector.broadcast %7 : vector<16x1xf32> to vector<16x32xf32>
    %9 = arith.subf %3, %8 : vector<16x32xf32>
    %10 = arith.mulf %9, %9 : vector<16x32xf32>
    %cst_6 = arith.constant dense<0.000000e+00> : vector<16xf32>
    %11 = vector.multi_reduction <add>, %10, %cst_6 [1] : vector<16x32xf32> to vector<16xf32>
    %12 = vector.shape_cast %11 : vector<16xf32> to vector<16x1xf32>
    %cst_7 = arith.constant 3.200000e+01 : f32
    %13 = vector.broadcast %cst_7 : f32 to vector<16x1xf32>
    %14 = arith.divf %12, %13 : vector<16x1xf32>
    %cst_8 = arith.constant 9.99999974E-6 : f32
    %15 = vector.broadcast %cst_8 : f32 to vector<16x1xf32>
    %16 = arith.addf %14, %15 : vector<16x1xf32>
    %17 = math.rsqrt %16 : vector<16x1xf32>
    %18 = vector.broadcast %17 : vector<16x1xf32> to vector<16x32xf32>
    %19 = arith.mulf %9, %18 : vector<16x32xf32>
    %20 = vector.broadcast %1 : vector<1x32xf32> to vector<16x32xf32>
    %21 = arith.mulf %19, %20 : vector<16x32xf32>
    %22 = vector.broadcast %2 : vector<1x32xf32> to vector<16x32xf32>
    %23 = arith.addf %21, %22 : vector<16x32xf32>
    %24 = arith.truncf %23 : vector<16x32xf32> to vector<16x32xbf16>
    %c0_9 = arith.constant 0 : index
    %c0_10 = arith.constant 0 : index
    %25 = vector.load %arg4[%c0_9, %c0_10] : memref<32x8xbf16, #tpu.memory_space<vmem>>, vector<32x8xbf16>
    %cst_11 = arith.constant dense<0.000000e+00> : vector<16x8xf32>
    %26 = tpu.matmul %24, %25, %cst_11 {dimension_numbers = #tpu.dot_dimension_numbers<[1], [0], [0], [1], [0, 0, 1, 1], [], []>} : vector<16x32xbf16>, vector<32x8xbf16>, vector<16x8xf32> -> vector<16x8xf32>
    %c0_12 = arith.constant 0 : index
    %c0_13 = arith.constant 0 : index
    %27 = vector.load %arg5[%c0_12, %c0_13] : memref<16x8xf32, #tpu.memory_space<vmem>>, vector<16x8xf32>
    tpu.vector_store %arg5[%c0_12, %c0_13], %26 {strides = array<i32>} : memref<16x8xf32, #tpu.memory_space<vmem>>, vector<16x8xf32>,
    return
  }
  func.func @transform_0(%arg0: i32) -> (i32, i32) {
    %c0_i32 = arith.constant 0 : i32
    %c0_i32_0 = arith.constant 0 : i32
    return %arg0, %c0_i32 : i32, i32
  }
  func.func @transform_1(%arg0: i32) -> (i32, i32) {
    %c0_i32 = arith.constant 0 : i32
    %c0_i32_0 = arith.constant 0 : i32
    %c0_i32_1 = arith.constant 0 : i32
    return %c0_i32, %c0_i32_0 : i32, i32
  }
  func.func @transform_2(%arg0: i32) -> (i32, i32) {
    %c0_i32 = arith.constant 0 : i32
    %c0_i32_0 = arith.constant 0 : i32
    %c0_i32_1 = arith.constant 0 : i32
    return %c0_i32, %c0_i32_0 : i32, i32
  }
  func.func @transform_3(%arg0: i32) -> (i32, i32) {
    %c0_i32 = arith.constant 0 : i32
    %c0_i32_0 = arith.constant 0 : i32
    %c0_i32_1 = arith.constant 0 : i32
    return %c0_i32, %c0_i32_0 : i32, i32
  }
  func.func @transform_4(%arg0: i32) -> (i32, i32) {
    %c0_i32 = arith.constant 0 : i32
    %c0_i32_0 = arith.constant 0 : i32
    return %arg0, %c0_i32 : i32, i32
  }
}

</mosaic_0001>

<bundles_post_ra>
// kernel: latent_array_transformer_forward.18
= control target key start
LH: loop header
LB: loop body
LE: loop exit
PB: predicated region body
PF: predicated region fallthrough
CT: control target
= control target key end

     0   :  { %vm20_vm0 = vcmask 1043456   ;;  %v95_v0 = vmov 0.0   ;;  %vm96_vm1 = vmmov 0   ;;  %vm16_vm2 = vcmask 64512   ;;  %s127_s1 = inlined_call_operand.vmem [shape: bf16[8,32], index: 1, kind: input, shape index: {}]   ;;  %s128_s0 = inlined_call_operand.vmem [shape: f32[16,8], index: 0, kind: input, shape index: {}]   ;;  %s129_s2 = inlined_call_operand.vmem [shape: bf16[16,32], index: 2, kind: output, shape index: {}]  }
   0x1   :  { %87 = vmatprep.subr.bf16.mxu0 %v95_v0  ;;  %v15_v1 = vld [vmem:[%s127_s1] sm:$0xf]  ;;  %89 = vmatprep.mubr.msk.bf16.mxu0 %vm96_vm1, %v95_v0  ;;  %v13_v3 = vld [vmem:[%s128_s0 + $0x8] sm:$0xff]  ;;  %vm73_vm3 = vcmask 257024  }
   0x2   :  { %v12_v2 = vld [vmem:[%s128_s0] sm:$0xff]  ;;  %v22_v4 = vsel %vm20_vm0, %v15_v1, 0 }
   0x3   :  { %v14_v5 = vpack.c.bf16 %v13_v3, %v12_v2  ;;  %88 = vmatpush3.bf16.msra.mxu0 %v22_v4 }
   0x6   :  { %90 = vmatmul.mubr.msk.bf16.vlgmr.msra.gmra.mrb[0].mxu0 %vm16_vm2, %v14_v5 }
  0xd9   :  { %v58_v6 = vpop.f32.mrb[0].mxu0 }
  0xda   :  { %v83_v7 = vpack.c.bf16 %v58_v6, %v58_v6  ;;  %v91_v8 = vpop.f32.mrb[1].mxu0 }
  0xdb   :  { %v61_v9 = vpop.f32.mrb[2].mxu0 }
  0xdc   :  { %74 = vst.msk [vmem:[%s129_s2] sm:$0xf] %vm73_vm3, %v83_v7  ;;  %v84_v10 = vpack.c.bf16 %v61_v9, %v61_v9  ;;  %v92_v11 = vpop.f32.mrb[3].mxu0 }
  0xde   :  { %75 = vst.msk [vmem:[%s129_s2 + $0x4] sm:$0xf] %vm73_vm3, %v84_v10 }

// kernel: latent_array_transformer_forward.21
= control target key start
LH: loop header
LB: loop body
LE: loop exit
PB: predicated region body
PF: predicated region fallthrough
CT: control target
= control target key end

     0   :  { %v143_v0 = vmov 0.0   ;;  %vm144_vm0 = vmmov 0   ;;  %vm48_vm1 = vcmask 261120   ;;  %vm107_vm2 = vcmask 257024   ;;  %s191_s2 = inlined_call_operand.vmem [shape: bf16[32,32], index: 2, kind: input, shape index: {}]   ;;  %s192_s0 = inlined_call_operand.vmem [shape: bf16[16,32], index: 0, kind: input, shape index: {}]   ;;  %s193_s1 = inlined_call_operand.vmem [shape: bf16[16,32], index: 1, kind: input, shape index: {}]   ;;  %s194_s3 = inlined_call_operand.vmem [shape: f32[1,32], index: 3, kind: input, shape index: {}]   ;;  %s195_s4 = inlined_call_operand.vmem [shape: bf16[16,32], index: 4, kind: output, shape index: {}]  }
   0x1   :  { %130 = vmatprep.subr.bf16.mxu0 %v143_v0  ;;  %v140_v1 = vld [vmem:[%s191_s2] sm:$0xff]   ;;  %134 = vmatprep.mubr.msk.bf16.mxu0 %vm144_vm0, %v143_v0  ;;  %v141_v2 = vld [vmem:[%s191_s2 + $0x8] sm:$0xff]  }
   0x2   :  { %131 = vmatpush3.bf16.msra.mxu0 %v140_v1  ;;  %v142_v3 = vld [vmem:[%s192_s0] sm:$0xff]  }
   0x3   :  { %132 = vmatprep.subr.bf16.mxu0 %v143_v0  ;;  %v124_v4 = vld [vmem:[%s193_s1] sm:$0xff]  }
   0x4   :  { %v114_v5 = vld [vmem:[%s194_s3] ss:$0 sm:$0xff]  ;;  %v125_v6 = vunpack.c.l.bf16 %v124_v4  ;;  %v126_v10 = vunpack.c.h.bf16 %v124_v4 }
   0x6   :  { %133 = vmatpush3.bf16.msra.mxu0 %v141_v2 }
   0x9   :  { %135 = vmatmul.mubr.msk.bf16.vlgmr.msra.gmra.mrb[0].mxu0 %vm48_vm1, %v142_v3 }
  0xdc   :  { %v86_v7 = vpop.f32.mrb[0].mxu0 }
  0xdd   :  { %v87_v8 = vadd.f32 %v114_v5, %v86_v7  ;;  %v136_v9 = vpop.f32.mrb[1].mxu0 }
  0xde   :  { %v89_v11 = vpop.f32.mrb[2].mxu0 }
  0xdf   :  { %v97_v12 = vadd.f32 %v125_v6, %v87_v8  ;;  %v90_v13 = vadd.f32 %v114_v5, %v89_v11  ;;  %v137_v14 = vpop.f32.mrb[3].mxu0 }
  0xe1   :  { %v121_v15 = vpack.c.bf16 %v97_v12, %v97_v12  ;;  %v98_v16 = vadd.f32 %v126_v10, %v90_v13 }
  0xe3   :  { %108 = vst.msk [vmem:[%s195_s4] sm:$0xf] %vm107_vm2, %v121_v15  ;;  %v122_v17 = vpack.c.bf16 %v98_v16, %v98_v16 }
  0xe5   :  { %109 = vst.msk [vmem:[%s195_s4 + $0x4] sm:$0xf] %vm107_vm2, %v122_v17 }

// kernel: latent_array_transformer_forward.19
= control target key start
LH: loop header
LB: loop body
LE: loop exit
PB: predicated region body
PF: predicated region fallthrough
CT: control target
= control target key end

     0   :  { %vm33_vm0 = vcmask 261120   ;;  %v367_v16 = vmov 0.0   ;;  %vm368_vm1 = vmmov 0   ;;  %vm146_vm2 = vcmask 257024   ;;  %s475_s0 = inlined_call_operand.vmem [shape: bf16[16,32], index: 0, kind: input, shape index: {}]   ;;  %s476_s3 = inlined_call_operand.vmem [shape: bf16[32,32], index: 3, kind: input, shape index: {}]   ;;  %s477_s4 = inlined_call_operand.vmem [shape: bf16[32,32], index: 4, kind: input, shape index: {}]   ;;  %s478_s5 = inlined_call_operand.vmem [shape: bf16[32,32], index: 5, kind: input, shape index: {}]   ;;  %s479_s1 = inlined_call_operand.vmem [shape: f32[1,32], index: 1, kind: input, shape index: {}]   ;;  %s480_s2 = inlined_call_operand.vmem [shape: f32[1,32], index: 2, kind: input, shape index: {}]   ;;  %s481_s6 = inlined_call_operand.vmem [shape: bf16[16,32], index: 6, kind: output, shape index: {0}]   ;;  %s482_s7 = inlined_call_operand.vmem [shape: bf16[16,32], index: 7, kind: output, shape index: {1}]   ;;  %s483_s8 = inlined_call_operand.vmem [shape: bf16[16,32], index: 8, kind: output, shape index: {2}]  }
   0x1   :  { %v319_v0 = vld [vmem:[%s475_s0] sm:$0xff]   ;;  %331 = vmatprep.subr.bf16.mxu0 %v367_v16  ;;  %339 = vmatprep.subr.bf16.mxu1 %v367_v16  ;;  %v359_v18 = vld [vmem:[%s476_s3 + $0x8] sm:$0xff]  }
   0x2   :  { %v320_v1 = vunpack.c.l.bf16 %v319_v0  ;;  %v321_v2 = vunpack.c.h.bf16 %v319_v0  ;;  %v357_v15 = vld [vmem:[%s476_s3] sm:$0xff]   ;;  %335 = vmatprep.mubr.msk.bf16.mxu0 %vm368_vm1, %v367_v16  ;;  %v360_v19 = vld [vmem:[%s477_s4 + $0x8] sm:$0xff]   ;;  %343 = vmatprep.mubr.msk.bf16.mxu1 %vm368_vm1, %v367_v16 }
   0x3   :  { %v358_v17 = vld [vmem:[%s477_s4] sm:$0xff]   ;;  %332 = vmatpush3.bf16.msra.mxu0 %v357_v15  ;;  %v362_v38 = vld [vmem:[%s478_s5 + $0x8] sm:$0xff]  }
   0x4   :  { %v34_v3 = vsel %vm33_vm0, %v320_v1, 0.0  ;;  %v37_v4 = vsel %vm33_vm0, %v321_v2, 0.0  ;;  %340 = vmatpush3.bf16.msra.mxu1 %v358_v17  ;;  %333 = vmatprep.subr.bf16.mxu0 %v367_v16  ;;  %v295_v28 = vld [vmem:[%s479_s1] ss:$0 sm:$0xff] }
   0x5   :  { %35 = vadd.xlane.f32.xlu0 %v34_v3  ;;  %341 = vmatprep.subr.bf16.mxu1 %v367_v16  ;;  %v296_v32 = vld [vmem:[%s480_s2] ss:$0 sm:$0xff] }
   0x6   :  { %v361_v36 = vld [vmem:[%s478_s5] sm:$0xff]  }
   0x7   :  { %334 = vmatpush3.bf16.msra.mxu0 %v359_v18 }
   0x8   :  { %342 = vmatpush3.bf16.msra.mxu1 %v360_v19  ;;  %347 = vmatprep.subr.bf16.mxu0 %v367_v16 }
   0x9   :  { %38 = vadd.xlane.f32.xlu0 %v37_v4 }
  0x92   :  { %v36_v5 = vpop.xlane.xlu0 %35 }
  0x93   :  { %v41_v6 = vmul.f32 0.03125, %v36_v5 }
  0x95   :  { %v43_v7 = vsub.f32 %v320_v1, %v41_v6 }
  0x96   :  { %v39_v8 = vpop.xlane.xlu0 %38 }
  0x97   :  { %v42_v9 = vmul.f32 0.03125, %v39_v8  ;;  %v45_v10 = vmul.f32 %v43_v7, %v43_v7 }
  0x99   :  { %v44_v11 = vsub.f32 %v321_v2, %v42_v9  ;;  %v47_v12 = vsel %vm33_vm0, %v45_v10, 0.0 }
  0x9a   :  { %48 = vadd.xlane.f32.xlu1 %v47_v12 }
  0x9b   :  { %v46_v13 = vmul.f32 %v44_v11, %v44_v11 }
  0x9d   :  { %v50_v14 = vsel %vm33_vm0, %v46_v13, 0.0 }
  0x9e   :  { %51 = vadd.xlane.f32.xlu1 %v50_v14 }
 0x127   :  { %v49_v20 = vpop.xlane.xlu1 %48 }
 0x128   :  { %v53_v21 = vmul.f32 0.03125, %v49_v20 }
 0x12a   :  { %v55_v22 = vadd.f32 1e-05, %v53_v21 }
 0x12b   :  { %v52_v23 = vpop.xlane.xlu1 %51 }
 0x12c   :  { %363 = vrsqrt.f32 %v55_v22  ;;  %v54_v24 = vmul.f32 0.03125, %v52_v23 }
 0x12e   :  { %v56_v25 = vadd.f32 1e-05, %v54_v24 }
 0x130   :  { %365 = vrsqrt.f32 %v56_v25 }
 0x136   :  { %v364_v26 = vpop.eup %363 }
 0x137   :  { %v59_v27 = vmul.f32 %v364_v26, %v43_v7 }
 0x139   :  { %v67_v31 = vmul.f32 %v295_v28, %v59_v27 }
 0x13a   :  { %v366_v29 = vpop.eup %365 }
 0x13b   :  { %v60_v30 = vmul.f32 %v366_v29, %v44_v11  ;;  %v75_v34 = vadd.f32 %v296_v32, %v67_v31 }
 0x13d   :  { %v68_v33 = vmul.f32 %v295_v28, %v60_v30 }
 0x13f   :  { %v76_v35 = vadd.f32 %v296_v32, %v68_v33 }
 0x141   :  { %v77_v37 = vpack.c.bf16 %v76_v35, %v75_v34 }
 0x143   :  { %336 = vmatmul.mubr.msk.bf16.vlgmr.msra.gmra.mrb[0].mxu0 %vm33_vm0, %v77_v37  ;;  %344 = vmatmul.mubr.msk.bf16.vlgmr.msra.gmra.mrb[0].mxu1 %vm33_vm0, %v77_v37 }
 0x144   :  { %348 = vmatpush3.bf16.msra.mxu0 %v361_v36  ;;  %351 = vmatprep.mubr.msk.bf16.mxu0 %vm368_vm1, %v367_v16 }
 0x145   :  { %349 = vmatprep.subr.bf16.mxu0 %v367_v16 }
 0x148   :  { %350 = vmatpush3.bf16.msra.mxu0 %v362_v38 }
 0x14b   :  { %352 = vmatmul.mubr.msk.bf16.vlgmr.msra.gmra.mrb[4].mxu0 %vm33_vm0, %v77_v37 }
 0x216   :  { %v131_v39 = vpop.f32.mrb[0].mxu0  ;;  %v199_v40 = vpop.f32.mrb[0].mxu1 }
 0x217   :  { %v312_v41 = vpack.c.bf16 %v131_v39, %v131_v39  ;;  %v314_v42 = vpack.c.bf16 %v199_v40, %v199_v40  ;;  %v337_v43 = vpop.f32.mrb[1].mxu0  ;;  %v345_v44 = vpop.f32.mrb[1].mxu1 }
 0x218   :  { %v134_v45 = vpop.f32.mrb[2].mxu0  ;;  %v202_v46 = vpop.f32.mrb[2].mxu1 }
 0x219   :  { %147 = vst.msk [vmem:[%s481_s6] sm:$0xf] %vm146_vm2, %v312_v41  ;;  %214 = vst.msk [vmem:[%s482_s7] sm:$0xf] %vm146_vm2, %v314_v42  ;;  %v313_v47 = vpack.c.bf16 %v134_v45, %v134_v45  ;;  %v315_v48 = vpack.c.bf16 %v202_v46, %v202_v46  ;;  %v338_v49 = vpop.f32.mrb[3].mxu0  ;;  %v346_v50 = vpop.f32.mrb[3].mxu1 }
 0x21b   :  { %148 = vst.msk [vmem:[%s481_s6 + $0x4] sm:$0xf] %vm146_vm2, %v313_v47  ;;  %215 = vst.msk [vmem:[%s482_s7 + $0x4] sm:$0xf] %vm146_vm2, %v315_v48 }
 0x21e   :  { %v266_v51 = vpop.f32.mrb[4].mxu0 }
 0x21f   :  { %v316_v52 = vpack.c.bf16 %v266_v51, %v266_v51  ;;  %v353_v53 = vpop.f32.mrb[5].mxu0 }
 0x220   :  { %v269_v54 = vpop.f32.mrb[6].mxu0 }
 0x221   :  { %281 = vst.msk [vmem:[%s483_s8] sm:$0xf] %vm146_vm2, %v316_v52  ;;  %v317_v55 = vpack.c.bf16 %v269_v54, %v269_v54  ;;  %v354_v56 = vpop.f32.mrb[7].mxu0 }
 0x223   :  { %282 = vst.msk [vmem:[%s483_s8 + $0x4] sm:$0xf] %vm146_vm2, %v317_v55 }

// kernel: latent_array_transformer_forward.20
= control target key start
LH: loop header
LB: loop body
LE: loop exit
PB: predicated region body
PF: predicated region fallthrough
CT: control target
= control target key end

     0   :  { %s628_s12 = smov 0   ;;  %s680_s0 = inlined_call_operand.vmem [shape: bf16[2,8,32], index: 0, kind: input, shape index: {}]   ;;  %s681_s1 = inlined_call_operand.vmem [shape: bf16[2,8,32], index: 1, kind: input, shape index: {}]   ;;  %s682_s2 = inlined_call_operand.vmem [shape: bf16[2,8,32], index: 2, kind: input, shape index: {}]   ;;  %s683_s3 = inlined_call_operand.vmem [shape: bf16[2,8,32], index: 3, kind: output, shape index: {}]  }
   0x1 LB: > { %s521_s13 = sadd.s32 4294967295, %s602_s12   ;;  %p525_p0 = scmp.ge.s32.totalorder %s602_s12, 1  ;;  %s602_s12 = sphi %s628_s12, %s13_s12  }
   0x2   : > { %p154_p1 = scmp.lt.s32.totalorder %s602_s12, 3 }
   0x4   : > { %p155_p2 = pnand %p525_p0, %p154_p1 }
   0x5   : > { %p184_p3 = scmp.lt.s32.totalorder (!%p155_p2), %s521_s13, 1  ;;  %v604_v0 = vmov (!%p155_p2), 0.0   ;;  %vm605_vm0 = vmmov (!%p155_p2), 0   ;;  %vm204_vm1 = vcmask (!%p155_p2), 130048   ;;  %vm252_vm2 = vcmask (!%p155_p2), 64512   ;;  %s606_s21 = smov (!%p155_p2), 112  }
   0x6   : > { %158 = sbr.rel (%p155_p2) target bundleno = 1423 (0x58f), region = 32  ;;  %549 = vmatprep.subr.bf16.mxu0 (!%p155_p2), %v604_v0  ;;  %551 = vmatprep.mubr.msk.bf16.mxu0 (!%p155_p2), %vm605_vm0, %v604_v0  ;;  %vm268_vm3 = vcmask (!%p155_p2), 1043456   ;;  %vm313_vm4 = vcmask (!%p155_p2), 125952   ;;  %s607_s28 = smov (!%p155_p2), 16   ;;  %vm442_vm5 = vcmask (!%p155_p2), 257152  }
   0x7   : > { %555 = vmatprep.subr.bf16.mxu1 (!%p155_p2), %v604_v0  ;;  %557 = vmatprep.mubr.msk.bf16.mxu1 (!%p155_p2), %vm605_vm0, %v604_v0 }
   0xd   : > { %s685_s13 = smov (!%p184_p3, %s521_s13), 1 }
   0xe   : > { %s638_s14 = sshll.u32 %s685_s13, 2 }
   0xf   : > { %s191_s17 = scalar_lea.vmem %s681_s1, %s638_s14  ;;  %s187_s20 = scalar_lea.vmem %s680_s0, %s638_s14 }
  0x10   : > { %v202_v1 = vld [vmem:[%s191_s17] sm:$0xf]  ;;  %s195_s24 = scalar_lea.vmem %s682_s2, %s638_s14  ;;  %s668_s27 = scalar_lea.vmem %s683_s3, %s638_s14 }
  0x11   : > { %v209_v2 = vsel %vm204_vm1, %v202_v1, 0  ;;  %v201_v3 = vld [vmem:[%s187_s20] sm:$0xf]  ;;  %v533_v10 = vcombine.low %v202_v1, %v202_v1 }
  0x12   : > { %550 = vmatpush3.bf16.xpose.msra.mxu0 %v209_v2  ;;  %v532_v11 = vcombine.low %v201_v3, %v201_v3  ;;  %v203_v17 = vld [vmem:[%s195_s24] sm:$0xf] }
  0x13   : > { %567 = vmatprep.subr.bf16.mxu0 %v604_v0  ;;  %323 = vrot.lane.b32.xlu1 %v533_v10, %s606_s21  ;;  %v270_v18 = vsel %vm268_vm3, %v203_v17, 0  ;;  %v535_v37 = vcombine.low %v203_v17, %v203_v17 }
  0x14   : > { %556 = vmatpush3.bf16.msra.mxu1 %v270_v18 }
  0x15   : > { %561 = vmatprep.subr.bf16.mxu1 %v604_v0 }
  0x17   : > { %318 = vrot.lane.b32.xlu1 %v532_v11, %s606_s21 }
  0x19   : > { %552 = vmatmul.mubr.msk.bf16.vlgmr.msra.gmra.mrb[0].mxu0 %vm204_vm1, %v201_v3 }
  0x1a   : > { %569 = vmatprep.mubr.msk.bf16.mxu0 %vm605_vm0, %v604_v0 }
  0x85   : > { %v324_v21 = vpop.permute.xlu1 %323 }
  0x86   : > { %v329_v23 = vsel %vm204_vm1, %v324_v21, 0 }
  0x89   : > { %v319_v25 = vpop.permute.xlu1 %318 }
  0xec   : > { %v245_v4 = vpop.f32.mrb[0].mxu0 }
  0xed   : > { %v251_v5 = vmul.f32 0.25, %v245_v4  ;;  %v553_v6 = vpop.f32.mrb[1].mxu0 }
  0xee   : > { %v248_v7 = vpop.f32.mrb[2].mxu0 }
  0xef   : > { %v554_v8 = vpop.f32.mrb[3].mxu0  ;;  %v253_v9 = vsel %vm252_vm2, %v251_v5, -inf }
  0xf0   : > { %254 = vmax.xlane.f32.xlu0 %v253_v9 }
 0x17d   : > { %v255_v12 = vpop.xlane.xlu0 %254 }
 0x17e   : > { %v256_v13 = vsub.f32 %v251_v5, %v255_v12 }
 0x180   : > { %v257_v14 = vmul.f32 1.442695, %v256_v13 }
 0x182   : > { %588 = vpow2.f32 %v257_v14 }
 0x18c   : > { %v589_v15 = vpop.eup %588 }
 0x18d   : > { %v259_v16 = vsel %vm252_vm2, %v589_v15, 0.0 }
 0x18e   : > { %260 = vadd.xlane.f32.xlu0 %v259_v16 }
 0x21b   : > { %v261_v19 = vpop.xlane.xlu0 %260 }
 0x21c   : > { %590 = vrcp.f32 %v261_v19 }
 0x226   : > { %v591_v20 = vpop.eup %590 }
 0x227   : > { %v263_v22 = vmul.f32 %v591_v20, %v589_v15 }
 0x229   : > { %v264_v24 = vpack.c.bf16 %v263_v22, %v263_v22 }
 0x22b   : > { %558 = vmatmul.mubr.msk.bf16.vlgmr.msra.gmra.mrb[0].mxu1 %vm252_vm2, %v264_v24 }
 0x22c   : > { %562 = vmatpush3.bf16.xpose.msra.mxu1 %v329_v23  ;;  %563 = vmatprep.mubr.msk.bf16.mxu1 %vm605_vm0, %v604_v0 }
 0x233   : > { %564 = vmatmul.mubr.msk.bf16.vlgmr.msra.gmra.mrb[4].mxu1 %vm204_vm1, %v319_v25 }
 0x2fe   : > { %v306_v26 = vpop.f32.mrb[0].mxu1 }
 0x2ff   : > { %v312_v27 = vpack.c.bf16 %v306_v26, %v306_v26  ;;  %v559_v28 = vpop.f32.mrb[1].mxu1 }
 0x300   : > { %v309_v29 = vpop.f32.mrb[2].mxu1 }
 0x301   : > { %314 = vst.msk [vmem:[%s668_s27] sm:$0xf] %vm313_vm4, %v312_v27  ;;  %v560_v30 = vpop.f32.mrb[3].mxu1 }
 0x306   : > { %v365_v31 = vpop.f32.mrb[4].mxu1 }
 0x307   : > { %v371_v32 = vmul.f32 0.25, %v365_v31  ;;  %v565_v33 = vpop.f32.mrb[5].mxu1 }
 0x308   : > { %v368_v34 = vpop.f32.mrb[6].mxu1 }
 0x309   : > { %v566_v35 = vpop.f32.mrb[7].mxu1  ;;  %v372_v36 = vsel %vm252_vm2, %v371_v32, -inf }
 0x30a   : > { %373 = vmax.xlane.f32.xlu0 %v372_v36 }
 0x320   : > { %387 = vrot.lane.b32.xlu0 %v535_v37, %s606_s21 }
 0x397   : > { %v374_v38 = vpop.xlane.xlu0 %373 }
 0x398   : > { %v375_v39 = vsub.f32 %v371_v32, %v374_v38 }
 0x39a   : > { %v376_v40 = vmul.f32 1.442695, %v375_v39 }
 0x39b   : > { %v388_v43 = vpop.permute.xlu0 %387 }
 0x39c   : > { %592 = vpow2.f32 %v376_v40  ;;  %v393_v44 = vsel %vm268_vm3, %v388_v43, 0 }
 0x39d   : > { %568 = vmatpush3.bf16.msra.mxu0 %v393_v44 }
 0x3a6   : > { %v593_v41 = vpop.eup %592 }
 0x3a7   : > { %v378_v42 = vsel %vm252_vm2, %v593_v41, 0.0 }
 0x3a8   : > { %379 = vadd.xlane.f32.xlu1 %v378_v42 }
 0x435   : > { %v380_v45 = vpop.xlane.xlu1 %379 }
 0x436   : > { %594 = vrcp.f32 %v380_v45 }
 0x440   : > { %v595_v46 = vpop.eup %594 }
 0x441   : > { %v382_v47 = vmul.f32 %v595_v46, %v593_v41 }
 0x443   : > { %v383_v48 = vpack.c.bf16 %v382_v47, %v382_v47 }
 0x445   : > { %570 = vmatmul.mubr.msk.bf16.vlgmr.msra.gmra.mrb[4].mxu0 %vm252_vm2, %v383_v48 }
 0x518   : > { %v429_v49 = vpop.f32.mrb[4].mxu0 }
 0x519   : > { %v540_v50 = vpack.c.bf16 %v429_v49, %v429_v49  ;;  %v571_v51 = vpop.f32.mrb[5].mxu0 }
 0x51a   : > { %v432_v52 = vpop.f32.mrb[6].mxu0 }
 0x51b   : > { %439 = vrot.lane.b32.xlu0 %v540_v50, %s607_s28  ;;  %v572_v53 = vpop.f32.mrb[7].mxu0 }
 0x58d   : > { %v440_v54 = vpop.permute.xlu0 %439 }
 0x58e   : > { %443 = vst.msk [vmem:[%s668_s27] sm:$0xf] %vm442_vm5, %v440_v54 }
 0x58f PF: > { %s13_s12 = sadd.s32 1, %s602_s12  }
 0x590   : > { %p10_p4 = scmp.ge.s32.totalorder %s13_s12, 4  }
 0x592   :  { %12 = sbr.rel (!%p10_p4) target bundleno = 1 (0x1), region = 68 }

// kernel: latent_array_transformer_forward.26
= control target key start
LH: loop header
LB: loop body
LE: loop exit
PB: predicated region body
PF: predicated region fallthrough
CT: control target
= control target key end

     0   :  { %v217_v0 = vmov 0.0   ;;  %vm218_vm0 = vmmov 0   ;;  %vm152_vm1 = vcmask 257024   ;;  %s283_s2 = inlined_call_operand.vmem [shape: bf16[128,32], index: 2, kind: input, shape index: {}]   ;;  %s284_s0 = inlined_call_operand.vmem [shape: bf16[16,128], index: 0, kind: input, shape index: {}]   ;;  %s285_s1 = inlined_call_operand.vmem [shape: bf16[16,32], index: 1, kind: input, shape index: {}]   ;;  %s286_s3 = inlined_call_operand.vmem [shape: f32[1,32], index: 3, kind: input, shape index: {}]   ;;  %s287_s4 = inlined_call_operand.vmem [shape: bf16[16,32], index: 4, kind: output, shape index: {}]  }
   0x1   :  { %186 = vmatprep.subr.bf16.mxu0 %v217_v0  ;;  %v208_v1 = vld [vmem:[%s283_s2] sm:$0xff]   ;;  %202 = vmatprep.mubr.msk.bf16.mxu0 %vm218_vm0, %v217_v0  ;;  %v209_v2 = vld [vmem:[%s283_s2 + $0x8] sm:$0xff]   ;;  %v210_v3 = vld [vmem:[%s283_s2 + $0x10] sm:$0xff]  }
   0x2   :  { %187 = vmatpush3.bf16.msra.mxu0 %v208_v1  ;;  %v211_v4 = vld [vmem:[%s283_s2 + $0x18] sm:$0xff]   ;;  %v212_v5 = vld [vmem:[%s283_s2 + $0x20] sm:$0xff]   ;;  %v213_v6 = vld [vmem:[%s283_s2 + $0x28] sm:$0xff]  }
   0x3   :  { %188 = vmatprep.subr.bf16.mxu0 %v217_v0  ;;  %v214_v7 = vld [vmem:[%s283_s2 + $0x30] sm:$0xff]   ;;  %v215_v8 = vld [vmem:[%s283_s2 + $0x38] sm:$0xff]   ;;  %v216_v9 = vld [vmem:[%s284_s0] sm:$0xff]  }
   0x4   :  { %v174_v10 = vld [vmem:[%s285_s1] sm:$0xff]  }
   0x5   :  { %v159_v11 = vld [vmem:[%s286_s3] ss:$0 sm:$0xff]  ;;  %v175_v12 = vunpack.c.l.bf16 %v174_v10  ;;  %v176_v16 = vunpack.c.h.bf16 %v174_v10 }
   0x6   :  { %189 = vmatpush3.bf16.msra.mxu0 %v209_v2 }
   0x7   :  { %190 = vmatprep.subr.bf16.mxu0 %v217_v0 }
   0xa   :  { %191 = vmatpush3.bf16.msra.mxu0 %v210_v3 }
   0xb   :  { %192 = vmatprep.subr.bf16.mxu0 %v217_v0 }
   0xe   :  { %193 = vmatpush3.bf16.msra.mxu0 %v211_v4 }
   0xf   :  { %194 = vmatprep.subr.bf16.mxu0 %v217_v0 }
  0x12   :  { %195 = vmatpush3.bf16.msra.mxu0 %v212_v5 }
  0x13   :  { %196 = vmatprep.subr.bf16.mxu0 %v217_v0 }
  0x16   :  { %197 = vmatpush3.bf16.msra.mxu0 %v213_v6 }
  0x17   :  { %198 = vmatprep.subr.bf16.mxu0 %v217_v0 }
  0x1a   :  { %199 = vmatpush3.bf16.msra.mxu0 %v214_v7 }
  0x1b   :  { %200 = vmatprep.subr.bf16.mxu0 %v217_v0 }
  0x1e   :  { %201 = vmatpush3.bf16.msra.mxu0 %v215_v8 }
  0x21   :  { %203 = vmatmul.mubr.bf16.vlgmr.msra.gmra.mrb[0].mxu0 %v216_v9 }
  0xf4   :  { %v131_v13 = vpop.f32.mrb[0].mxu0 }
  0xf5   :  { %v132_v14 = vadd.f32 %v159_v11, %v131_v13  ;;  %v204_v15 = vpop.f32.mrb[1].mxu0 }
  0xf6   :  { %v134_v17 = vpop.f32.mrb[2].mxu0 }
  0xf7   :  { %v142_v18 = vadd.f32 %v175_v12, %v132_v14  ;;  %v135_v19 = vadd.f32 %v159_v11, %v134_v17  ;;  %v205_v20 = vpop.f32.mrb[3].mxu0 }
  0xf9   :  { %v171_v21 = vpack.c.bf16 %v142_v18, %v142_v18  ;;  %v143_v22 = vadd.f32 %v176_v16, %v135_v19 }
  0xfb   :  { %153 = vst.msk [vmem:[%s287_s4] sm:$0xf] %vm152_vm1, %v171_v21  ;;  %v172_v23 = vpack.c.bf16 %v143_v22, %v143_v22 }
  0xfd   :  { %154 = vst.msk [vmem:[%s287_s4 + $0x4] sm:$0xf] %vm152_vm1, %v172_v23 }

// kernel: latent_array_transformer_forward.35
= control target key start
LH: loop header
LB: loop body
LE: loop exit
PB: predicated region body
PF: predicated region fallthrough
CT: control target
= control target key end

     0   :  { %vm25_vm0 = vcmask 261120   ;;  %s266_s0 = inlined_call_operand.vmem [shape: bf16[16,32], index: 0, kind: input, shape index: {}]   ;;  %s267_s1 = inlined_call_operand.vmem [shape: f32[1,32], index: 1, kind: input, shape index: {}]   ;;  %s268_s2 = inlined_call_operand.vmem [shape: f32[1,32], index: 2, kind: input, shape index: {}]   ;;  %s269_s3 = inlined_call_operand.vmem [shape: bf16[32,8], index: 3, kind: input, shape index: {}]   ;;  %s270_s4 = inlined_call_operand.hbm [shape: f32[16,8], index: 4, kind: output, shape index: {}]  }
   0x1   :  { %v155_v0 = vld [vmem:[%s266_s0] sm:$0xff]  }
   0x2   :  { %v156_v1 = vunpack.c.l.bf16 %v155_v0  ;;  %v157_v2 = vunpack.c.h.bf16 %v155_v0 }
   0x3   :  { %9 = vsyncpa [#allocation3], 0  ;;  %v174_v15 = vld [vmem:[%s269_s3] sm:$0xff]   ;;  %v204_v16 = vmov 0.0   ;;  %v175_v17 = vld [vmem:[%s269_s3 + $0x8] sm:$0xff]   ;;  %vm205_vm1 = vmmov 0  }
   0x4   :  { %v26_v3 = vsel %vm25_vm0, %v156_v1, 0.0  ;;  %v29_v4 = vsel %vm25_vm0, %v157_v2, 0.0  ;;  %161 = vmatprep.subr.bf16.mxu0 %v204_v16  ;;  %165 = vmatprep.mubr.msk.bf16.mxu0 %vm205_vm1, %v204_v16  ;;  %v149_v26 = vld [vmem:[%s267_s1] ss:$0 sm:$0xff]  ;;  %s206_s23 = smov [#allocation2]   ;;  %vm130_vm2 = vcmask 64512  }
   0x5   :  { %27 = vadd.xlane.f32.xlu0 %v26_v3  ;;  %162 = vmatpush3.bf16.msra.mxu0 %v174_v15  ;;  %v150_v30 = vld [vmem:[%s268_s2] ss:$0 sm:$0xff]  ;;  %s138_s24 = sshll.u32 %s206_s23, 4  ;;  %s139_s24 = int_to_ptr.vmem [resolvable:$true] %s138_s24 }
   0x6   :  { %163 = vmatprep.subr.bf16.mxu0 %v204_v16  ;;  %s180_s1 = scalar_lea.vmem %s139_s24, 256  ;;  %p185_p1 = scmp.lt.s32.totalorder %s139_s24, %s139_s24 }
   0x7   :  { %p181_p0 = scmp.ne.s32.totalorder %s139_s24, %s180_s1  ;;  %p186_p2 = scmp.lt.s32.totalorder %s180_s1, %s180_s1 }
   0x9   :  { %30 = vadd.xlane.f32.xlu0 %v29_v4  ;;  %164 = vmatpush3.bf16.msra.mxu0 %v175_v17  ;;  %p187_p3 = por %p186_p2, %p185_p1 }
   0xb   :  { %p188_p4 = pnand %p187_p3, %p181_p0 }
  0x92   :  { %v28_v5 = vpop.xlane.xlu0 %27 }
  0x93   :  { %v33_v6 = vmul.f32 0.03125, %v28_v5 }
  0x95   :  { %v35_v7 = vsub.f32 %v156_v1, %v33_v6 }
  0x96   :  { %v31_v8 = vpop.xlane.xlu0 %30 }
  0x97   :  { %v34_v9 = vmul.f32 0.03125, %v31_v8  ;;  %v37_v10 = vmul.f32 %v35_v7, %v35_v7 }
  0x99   :  { %v36_v11 = vsub.f32 %v157_v2, %v34_v9  ;;  %v39_v12 = vsel %vm25_vm0, %v37_v10, 0.0 }
  0x9a   :  { %40 = vadd.xlane.f32.xlu1 %v39_v12 }
  0x9b   :  { %v38_v13 = vmul.f32 %v36_v11, %v36_v11 }
  0x9d   :  { %v42_v14 = vsel %vm25_vm0, %v38_v13, 0.0 }
  0x9e   :  { %43 = vadd.xlane.f32.xlu1 %v42_v14 }
 0x127   :  { %v41_v18 = vpop.xlane.xlu1 %40 }
 0x128   :  { %v45_v19 = vmul.f32 0.03125, %v41_v18 }
 0x12a   :  { %v47_v20 = vadd.f32 1e-05, %v45_v19 }
 0x12b   :  { %v44_v21 = vpop.xlane.xlu1 %43 }
 0x12c   :  { %176 = vrsqrt.f32 %v47_v20  ;;  %v46_v22 = vmul.f32 0.03125, %v44_v21 }
 0x12e   :  { %v48_v23 = vadd.f32 1e-05, %v46_v22 }
 0x130   :  { %178 = vrsqrt.f32 %v48_v23 }
 0x136   :  { %v177_v24 = vpop.eup %176 }
 0x137   :  { %v51_v25 = vmul.f32 %v177_v24, %v35_v7 }
 0x139   :  { %v59_v29 = vmul.f32 %v149_v26, %v51_v25 }
 0x13a   :  { %v179_v27 = vpop.eup %178 }
 0x13b   :  { %v52_v28 = vmul.f32 %v179_v27, %v36_v11  ;;  %v67_v32 = vadd.f32 %v150_v30, %v59_v29 }
 0x13d   :  { %v60_v31 = vmul.f32 %v149_v26, %v52_v28 }
 0x13f   :  { %v68_v33 = vadd.f32 %v150_v30, %v60_v31 }
 0x141   :  { %v69_v34 = vpack.c.bf16 %v68_v33, %v67_v32 }
 0x143   :  { %166 = vmatmul.mubr.msk.bf16.vlgmr.msra.gmra.mrb[0].mxu0 %vm25_vm0, %v69_v34 }
 0x216   :  { %v123_v35 = vpop.f32.mrb[0].mxu0 }
 0x217   :  { %131 = vst.msk [vmem:[#allocation2] sm:$0xff] %vm130_vm2, %v123_v35  ;;  %v167_v36 = vpop.f32.mrb[1].mxu0 }
 0x218   :  { %v126_v37 = vpop.f32.mrb[2].mxu0 }
 0x219   :  { %132 = vst.msk [vmem:[#allocation2 + $0x8] sm:$0xff] %vm130_vm2, %v126_v37  ;;  %v168_v38 = vpop.f32.mrb[3].mxu0 }
 0x21a   :  { %191 = shalt.err (!%p188_p4)
}
 0x21b   :  { %s192_s26 = scalar_lea.hbm %s270_s4, 256 }
 0x21c   :  { %p193_p5 = scmp.ne.s32.totalorder %s270_s4, %s192_s26  ;;  %p196_p6 = scmp.lt.u32.totalorder %s192_s26, %s270_s4 }
 0x21e   :  { %p198_p7 = pnand %p196_p6, %p193_p5 }
 0x220   :  { %201 = shalt.err (!%p198_p7)
}
 0x221   :  { %s207_s5 = smov 128   ;;  %s208_s6 = smov 8  }
 0x222   :  { %144 = dma.vmem_to_hbm [thread:$0]  %s139_s24, 256, %s270_s4, [#allocation3], %s207_s5, %s207_s5, %s208_s6  }
 0x223   :  { %202 = dma.done.wait [#allocation3], 256  }
 0x224   :  { %203 = vsyncadd [#allocation3], 4294967040 }
 0x225   :  { %148 = vsyncpa [#allocation3], 1 }

// kernel: latent_array_transformer_forward.25
= control target key start
LH: loop header
LB: loop body
LE: loop exit
PB: predicated region body
PF: predicated region fallthrough
CT: control target
= control target key end

     0   :  { %vm33_vm0 = vcmask 261120   ;;  %v302_v16 = vmov 0.0   ;;  %vm303_vm1 = vmmov 0   ;;  %s380_s0 = inlined_call_operand.vmem [shape: bf16[16,32], index: 0, kind: input, shape index: {}]   ;;  %s381_s3 = inlined_call_operand.vmem [shape: bf16[32,128], index: 3, kind: input, shape index: {}]   ;;  %s382_s4 = inlined_call_operand.vmem [shape: bf16[32,128], index: 4, kind: input, shape index: {}]   ;;  %s383_s1 = inlined_call_operand.vmem [shape: f32[1,32], index: 1, kind: input, shape index: {}]   ;;  %s384_s2 = inlined_call_operand.vmem [shape: f32[1,32], index: 2, kind: input, shape index: {}]   ;;  %s385_s6 = inlined_call_operand.vmem [shape: f32[1,128], index: 6, kind: input, shape index: {}]   ;;  %s386_s5 = inlined_call_operand.vmem [shape: f32[1,128], index: 5, kind: input, shape index: {}]   ;;  %s387_s7 = inlined_call_operand.vmem [shape: bf16[16,128], index: 7, kind: output, shape index: {}]  }
   0x1   :  { %v258_v0 = vld [vmem:[%s380_s0] sm:$0xff]   ;;  %272 = vmatprep.subr.bf16.mxu0 %v302_v16  ;;  %280 = vmatprep.subr.bf16.mxu1 %v302_v16  ;;  %v292_v18 = vld [vmem:[%s381_s3 + $0x8] sm:$0xff]  }
   0x2   :  { %v259_v1 = vunpack.c.l.bf16 %v258_v0  ;;  %v260_v2 = vunpack.c.h.bf16 %v258_v0  ;;  %v290_v15 = vld [vmem:[%s381_s3] sm:$0xff]   ;;  %276 = vmatprep.mubr.msk.bf16.mxu0 %vm303_vm1, %v302_v16  ;;  %v293_v19 = vld [vmem:[%s382_s4 + $0x8] sm:$0xff]   ;;  %284 = vmatprep.mubr.msk.bf16.mxu1 %vm303_vm1, %v302_v16 }
   0x3   :  { %v291_v17 = vld [vmem:[%s382_s4] sm:$0xff]   ;;  %273 = vmatpush3.bf16.msra.mxu0 %v290_v15 }
   0x4   :  { %v34_v3 = vsel %vm33_vm0, %v259_v1, 0.0  ;;  %v37_v4 = vsel %vm33_vm0, %v260_v2, 0.0  ;;  %281 = vmatpush3.bf16.msra.mxu1 %v291_v17  ;;  %274 = vmatprep.subr.bf16.mxu0 %v302_v16  ;;  %v243_v28 = vld [vmem:[%s383_s1] ss:$0 sm:$0xff] }
   0x5   :  { %35 = vadd.xlane.f32.xlu0 %v34_v3  ;;  %282 = vmatprep.subr.bf16.mxu1 %v302_v16  ;;  %v244_v32 = vld [vmem:[%s384_s2] ss:$0 sm:$0xff] }
   0x6   :  { %v249_v37 = vld [vmem:[%s385_s6] ss:$0 sm:$0xff] }
   0x7   :  { %275 = vmatpush3.bf16.msra.mxu0 %v292_v18  ;;  %v245_v59 = vld [vmem:[%s386_s5] ss:$0 sm:$0xff] }
   0x8   :  { %283 = vmatpush3.bf16.msra.mxu1 %v293_v19 }
   0x9   :  { %38 = vadd.xlane.f32.xlu0 %v37_v4 }
  0x92   :  { %v36_v5 = vpop.xlane.xlu0 %35 }
  0x93   :  { %v41_v6 = vmul.f32 0.03125, %v36_v5 }
  0x95   :  { %v43_v7 = vsub.f32 %v259_v1, %v41_v6 }
  0x96   :  { %v39_v8 = vpop.xlane.xlu0 %38 }
  0x97   :  { %v42_v9 = vmul.f32 0.03125, %v39_v8  ;;  %v45_v10 = vmul.f32 %v43_v7, %v43_v7 }
  0x99   :  { %v44_v11 = vsub.f32 %v260_v2, %v42_v9  ;;  %v47_v12 = vsel %vm33_vm0, %v45_v10, 0.0 }
  0x9a   :  { %48 = vadd.xlane.f32.xlu1 %v47_v12 }
  0x9b   :  { %v46_v13 = vmul.f32 %v44_v11, %v44_v11 }
  0x9d   :  { %v50_v14 = vsel %vm33_vm0, %v46_v13, 0.0 }
  0x9e   :  { %51 = vadd.xlane.f32.xlu1 %v50_v14 }
 0x127   :  { %v49_v20 = vpop.xlane.xlu1 %48 }
 0x128   :  { %v53_v21 = vmul.f32 0.03125, %v49_v20 }
 0x12a   :  { %v55_v22 = vadd.f32 1e-05, %v53_v21 }
 0x12b   :  { %v52_v23 = vpop.xlane.xlu1 %51 }
 0x12c   :  { %294 = vrsqrt.f32 %v55_v22  ;;  %v54_v24 = vmul.f32 0.03125, %v52_v23 }
 0x12e   :  { %v56_v25 = vadd.f32 1e-05, %v54_v24 }
 0x130   :  { %296 = vrsqrt.f32 %v56_v25 }
 0x136   :  { %v295_v26 = vpop.eup %294 }
 0x137   :  { %v59_v27 = vmul.f32 %v295_v26, %v43_v7 }
 0x139   :  { %v67_v31 = vmul.f32 %v243_v28, %v59_v27 }
 0x13a   :  { %v297_v29 = vpop.eup %296 }
 0x13b   :  { %v60_v30 = vmul.f32 %v297_v29, %v44_v11  ;;  %v75_v34 = vadd.f32 %v244_v32, %v67_v31 }
 0x13d   :  { %v68_v33 = vmul.f32 %v243_v28, %v60_v30 }
 0x13f   :  { %v76_v35 = vadd.f32 %v244_v32, %v68_v33 }
 0x141   :  { %v77_v36 = vpack.c.bf16 %v76_v35, %v75_v34 }
 0x143   :  { %277 = vmatmul.mubr.msk.bf16.vlgmr.msra.gmra.mrb[0].mxu0 %vm33_vm0, %v77_v36  ;;  %285 = vmatmul.mubr.msk.bf16.vlgmr.msra.gmra.mrb[0].mxu1 %vm33_vm0, %v77_v36 }
 0x216   :  { %v138_v38 = vpop.f32.mrb[0].mxu0  ;;  %v202_v39 = vpop.f32.mrb[0].mxu1 }
 0x217   :  { %v203_v40 = vadd.f32 %v249_v37, %v202_v39  ;;  %v278_v41 = vpop.f32.mrb[1].mxu0  ;;  %v286_v42 = vpop.f32.mrb[1].mxu1  ;;  %v139_v63 = vadd.f32 %v245_v59, %v138_v38 }
 0x218   :  { %v141_v43 = vpop.f32.mrb[2].mxu0  ;;  %v205_v44 = vpop.f32.mrb[2].mxu1 }
 0x219   :  { %v211_v45 = vmul.f32 0.044715, %v203_v40  ;;  %v206_v46 = vadd.f32 %v249_v37, %v205_v44  ;;  %v279_v47 = vpop.f32.mrb[3].mxu0  ;;  %v287_v48 = vpop.f32.mrb[3].mxu1  ;;  %v209_v60 = vmul.f32 0.5, %v203_v40  ;;  %v142_v4 = vadd.f32 %v245_v59, %v141_v43 }
 0x21b   :  { %v213_v49 = vmul.f32 %v211_v45, %v203_v40  ;;  %v212_v50 = vmul.f32 0.044715, %v206_v46  ;;  %v210_v1 = vmul.f32 0.5, %v206_v46 }
 0x21d   :  { %v215_v51 = vmul.f32 %v213_v49, %v203_v40  ;;  %v214_v52 = vmul.f32 %v212_v50, %v206_v46 }
 0x21f   :  { %v217_v53 = vadd.f32 %v215_v51, %v203_v40  ;;  %v216_v54 = vmul.f32 %v214_v52, %v206_v46 }
 0x221   :  { %v219_v55 = vmul.f32 0.7978846, %v217_v53  ;;  %v218_v56 = vadd.f32 %v216_v54, %v206_v46 }
 0x223   :  { %298 = vtanh.f32 %v219_v55  ;;  %v220_v57 = vmul.f32 0.7978846, %v218_v56 }
 0x225   :  { %300 = vtanh.f32 %v220_v57 }
 0x22d   :  { %v299_v58 = vpop.eup %298 }
 0x22e   :  { %v223_v61 = vadd.f32 1.0, %v299_v58 }
 0x22f   :  { %v301_v62 = vpop.eup %300 }
 0x230   :  { %v225_v0 = vmul.f32 %v223_v61, %v209_v60  ;;  %v224_v2 = vadd.f32 1.0, %v301_v62 }
 0x232   :  { %v227_v3 = vmul.f32 %v225_v0, %v139_v63  ;;  %v226_v5 = vmul.f32 %v224_v2, %v210_v1 }
 0x234   :  { %v228_v6 = vmul.f32 %v226_v5, %v142_v4 }
 0x236   :  { %v264_v7 = vpack.c.bf16 %v228_v6, %v227_v3 }
 0x238   :  { %265 = vst [vmem:[%s387_s7] sm:$0xff] %v264_v7  }

</bundles_post_ra>
